<compile_context>
chip_gen: v7x
topology: tpu7x:2x2x1
jax: 0.10.0
libtpu: 0.0.40
codegen_flags: <defaults>
</compile_context>

<pallas_src>
import math
from functools import partial

import jax
import jax.numpy as jnp
from jax.experimental import pallas as pl
from jax.experimental.pallas import tpu as pltpu


def _round_up(x, m):
    return ((x + m - 1) // m) * m


def _vmem_capacity_bytes():
    try:
        cap = getattr(pltpu.get_tpu_info(), "vmem_capacity_bytes", None)
        if cap:
            return int(cap)
    except Exception:
        pass
    return 64 * 1024 * 1024   # conservative (v7x-sized) fallback


# ----------------------------- Pallas kernels ------------------------------ #
def _cmul_mxu_kernel(a_ref, w_ref, o_ref):
    # a: [TF, 2C, Mt], w: [TF, 2Dp, 2C] -> o: [TF, 2Dp, Mt]
    # f32 accumulation on the MXU, narrow (bf16) store.
    acc = jnp.einsum("fdc,fcm->fdm", w_ref[...], a_ref[...],
                     preferred_element_type=jnp.float32)
    o_ref[...] = acc.astype(o_ref.dtype)


def _make_cmul_vpu_kernel(two_c):
    # Tiny-channel path: skip the MXU; unrolled VPU multiply-add with a local
    # accumulator and a SINGLE store (no per-channel read-modify-write of the
    # output tile, which previously saturated the vst slot).
    def kernel(a_ref, w_ref, o_ref):
        av = a_ref[...].astype(jnp.float32)   # [TF, 2C,  Mt]
        wv = w_ref[...].astype(jnp.float32)   # [TF, 2Dp, 2C]
        acc = wv[:, :, 0][..., None] * av[:, 0, :][:, None, :]
        for c in range(1, two_c):
            acc = acc + wv[:, :, c][..., None] * av[:, c, :][:, None, :]
        o_ref[...] = acc.astype(o_ref.dtype)
    return kernel


def compl_mul_conjugate_pallas(a, w):
    """a: [Nf, 2C, M], w: [Nf, 2Dp, 2C] (f32) -> out: [Nf, 2Dp, M].

    out[f] = w[f] @ a[f]; with the [[wr, wi], [-wi, wr]] stacking of w and the
    [ar; ai] stacking of a this is exactly a * conj(w) contracted over C.
    """
    Nf, two_c, M = a.shape
    _, two_dp, _ = w.shape

    # Tiny channel counts: a degenerate MXU matmul is not worth it -> VPU path
    # kept in f32 (v5e has no bf16 VALU; the traffic is negligible there).
    use_vpu = two_c <= 16
    compute_dtype = jnp.float32 if use_vpu else jnp.bfloat16
    out_dtype = compute_dtype
    a = a.astype(compute_dtype)
    w = w.astype(compute_dtype)
    in_item = jnp.dtype(compute_dtype).itemsize
    out_item = jnp.dtype(out_dtype).itemsize
    in_sub = 8 * (4 // in_item)      # sublane multiple: 8 (f32) / 16 (bf16)
    out_sub = 8 * (4 // out_item)

    # Lane-align M only (<=127 padded columns); the grid uses cdiv so edge
    # blocks along f / m carry no extra padding traffic.
    M_p = _round_up(M, 128)
    if M_p != M:
        a = jnp.pad(a, ((0, 0), (0, 0), (0, M_p - M)))
    Mt = min(512, M_p)

    # Per-frequency VMEM footprint with (sublane, lane) tile padding; the
    # BlockSpec pipeline double-buffers.  Budget scales with the chip's VMEM
    # (v5e/v6e: 16 MiB budget / 64 MiB limit; v7x: 8 MiB / 32 MiB).
    vmem_cap = _vmem_capacity_bytes()
    budget = max(4 * 1024 * 1024, vmem_cap // 8)
    vmem_limit = max(32 * 1024 * 1024,
                     min(vmem_cap // 2, 96 * 1024 * 1024))
    per_tf = (_round_up(two_c, in_sub) * Mt * in_item                        # A
              + _round_up(two_dp, in_sub) * _round_up(two_c, 128) * in_item  # W
              + _round_up(two_dp, out_sub) * Mt * out_item)                  # O
    tf = int(max(1, min(budget // (2 * per_tf), 128, Nf)))

    # Guarantee >= 2 parallel blocks so both TensorCores of a v7x chip get
    # work (no effect on single-core v5e/v6e).
    if pl.cdiv(Nf, tf) * pl.cdiv(M_p, Mt) < 2:
        if Nf >= 2:
            tf = pl.cdiv(Nf, 2)
        elif M_p >= 256:
            Mt = _round_up(M_p // 2, 128)

    grid = (pl.cdiv(Nf, tf), pl.cdiv(M_p, Mt))
    a_spec = pl.BlockSpec((tf, two_c, Mt), lambda f, m: (f, 0, m))
    w_spec = pl.BlockSpec((tf, two_dp, two_c), lambda f, m: (f, 0, 0))
    o_spec = pl.BlockSpec((tf, two_dp, Mt), lambda f, m: (f, 0, m))

    kernel = _make_cmul_vpu_kernel(two_c) if use_vpu else _cmul_mxu_kernel

    flops = 2 * Nf * M_p * two_c * two_dp
    bytes_accessed = (Nf * two_c * M_p * in_item
                      + Nf * two_dp * two_c * in_item
                      + Nf * two_dp * M_p * out_item)

    out = pl.pallas_call(
        kernel,
        out_shape=jax.ShapeDtypeStruct((Nf, two_dp, M_p), out_dtype),
        grid=grid,
        in_specs=[a_spec, w_spec],
        out_specs=o_spec,
        compiler_params=pltpu.CompilerParams(
            dimension_semantics=("parallel", "parallel"),
            vmem_limit_bytes=int(vmem_limit)),
        cost_estimate=pl.CostEstimate(
            flops=int(flops), transcendentals=0,
            bytes_accessed=int(bytes_accessed)),
    )(a, w)
    return out[:, :, :M]


# ------------------------------- JAX glue ---------------------------------- #
def _unfold(x, frame_length, frame_step):
    """julius.core.unfold: [..., T] -> [..., n_frames, frame_length]."""
    length = x.shape[-1]
    n_frames = math.ceil((max(length, frame_length) - frame_length)
                         / frame_step) + 1
    tgt_length = (n_frames - 1) * frame_step + frame_length
    pad = [(0, 0)] * (x.ndim - 1) + [(0, tgt_length - length)]
    xp = jnp.pad(x, pad)
    idx = (jnp.arange(n_frames)[:, None] * frame_step
           + jnp.arange(frame_length)[None, :])
    return xp[..., idx]


@partial(jax.jit, static_argnames=("stride", "padding", "block_ratio"))
def fft_conv1d(x, weight, bias=None, *, stride=1, padding=0, block_ratio=5.0):
    """Same semantics as the PyTorch fft_conv1d (i.e. F.conv1d via FFT)."""
    x = jnp.pad(x, ((0, 0), (0, 0), (padding, padding)))
    B, C, length = x.shape
    D, _, K = weight.shape
    if length < K:
        raise RuntimeError("Input should be at least as large as the kernel.")
    if block_ratio < 1:
        raise RuntimeError("Block ratio must be greater than 1.")
    block_size = min(int(K * block_ratio), length)
    fold_stride = block_size - K + 1

    weight_p = jnp.pad(weight, ((0, 0), (0, 0), (0, block_size - K)))
    # TODO(synk): rfft/irfft have no Pallas equivalent; kept as XLA ops.
    wz = jnp.fft.rfft(weight_p, axis=-1)                 # [D, C, Nf] complex
    frames = _unfold(x, block_size, fold_stride)         # [B, C, Fr, block]
    fz = jnp.fft.rfft(frames, axis=-1)                   # [B, C, Fr, Nf]
    Fr = frames.shape[2]
    Nf = fz.shape[-1]
    M = B * Fr
    Dp = _round_up(D, 8)

    # Stacked, frequency-major, lane-dense activations A = [ar; ai]: one
    # stack + transpose (fused under jit) instead of 2 transposes + concat.
    a_ri = jnp.stack([jnp.real(fz), jnp.imag(fz)], axis=1)  # [B, 2, C, Fr, Nf]
    A = jnp.transpose(a_ri, (4, 1, 2, 0, 3)).reshape(Nf, 2 * C, M)

    # Stacked weights W = [[wr, wi], [-wi, wr]] (D padded to Dp on sublanes).
    w_re = jnp.transpose(jnp.real(wz), (2, 0, 1))           # [Nf, D, C]
    w_im = jnp.transpose(jnp.imag(wz), (2, 0, 1))
    pad_d = ((0, 0), (0, Dp - D), (0, 0))
    w_re = jnp.pad(w_re, pad_d)
    w_im = jnp.pad(w_im, pad_d)
    W = jnp.concatenate(
        [jnp.concatenate([w_re, w_im], axis=2),
         jnp.concatenate([-w_im, w_re], axis=2)], axis=1)

    out_s = compl_mul_conjugate_pallas(A, W)                # [Nf, 2Dp, M]
    o_re = jnp.transpose(out_s[:, :D, :].reshape(Nf, D, B, Fr),
                         (2, 1, 3, 0)).astype(jnp.float32)
    o_im = jnp.transpose(out_s[:, Dp:Dp + D, :].reshape(Nf, D, B, Fr),
                         (2, 1, 3, 0)).astype(jnp.float32)
    out_z = jax.lax.complex(o_re, o_im)
    out = jnp.fft.irfft(out_z, n=block_size, axis=-1)       # [B, D, Fr, block]

    out = out[..., :fold_stride]                            # == out[..., :-K+1]
    out = out.reshape(B, D, -1)
    out = out[..., ::stride]
    target_length = (length - K) // stride + 1
    out = out[..., :target_length]
    if bias is not None:
        out = out + bias[:, None]
    return out.astype(jnp.float32)


class FFTConv1d:
    """JAX/Pallas port of the PyTorch FFTConv1d module."""

    def __init__(self, in_channels, out_channels, kernel_size,
                 stride=1, padding=0, bias=True, *, key):
        self.in_channels = in_channels
        self.out_channels = out_channels
        self.kernel_size = kernel_size
        self.stride = stride
        self.padding = padding
        kw, kb = jax.random.split(key)
        bound = 1.0 / math.sqrt(in_channels * kernel_size)
        self.weight = jax.random.uniform(
            kw, (out_channels, in_channels, kernel_size),
            minval=-bound, maxval=bound, dtype=jnp.float32)
        self.bias = (jax.random.uniform(kb, (out_channels,),
                                        minval=-bound, maxval=bound,
                                        dtype=jnp.float32)
                     if bias else None)

    def __call__(self, x):
        return fft_conv1d(x, self.weight, self.bias,
                          stride=self.stride, padding=self.padding)


# --------------------------------- main ------------------------------------ #
def _reference_conv(x, weight, bias, stride, padding):
    ref = jax.lax.conv_general_dilated(
        x, weight, window_strides=(stride,),
        padding=[(padding, padding)],
        dimension_numbers=("NCH", "OIH", "NCH"),
        precision=jax.lax.Precision.HIGHEST)
    if bias is not None:
        ref = ref + bias[:, None]
    return ref


if __name__ == "__main__":
    key = jax.random.PRNGKey(0)

    # --- Test 1: tiny channels (exercises the f32 VPU contraction path) ---- #
    k_mod, k_x, key = jax.random.split(key, 3)
    B, Cin, Cout, K, T = 2, 4, 6, 8, 64
    stride, padding = 2, 3
    mod = FFTConv1d(Cin, Cout, K, stride=stride, padding=padding,
                    bias=True, key=k_mod)
    x = jax.random.normal(k_x, (B, Cin, T), dtype=jnp.float32)
    out = jax.block_until_ready(mod(x))
    ref = _reference_conv(x, mod.weight, mod.bias, stride, padding)
    expected_len = (T + 2 * padding - K) // stride + 1
    assert out.shape == (B, Cout, expected_len), out.shape
    assert out.dtype == jnp.float32
    assert jnp.allclose(out, ref, atol=5e-2, rtol=5e-2), (
        float(jnp.max(jnp.abs(out - ref))))

    # --- Test 2: larger channels (exercises the bf16 batched-MXU path) ----- #
    k_mod2, k_x2, key = jax.random.split(key, 3)
    B2, Cin2, Cout2, K2, T2 = 2, 16, 16, 16, 128
    stride2, padding2 = 1, 0
    mod2 = FFTConv1d(Cin2, Cout2, K2, stride=stride2, padding=padding2,
                     bias=True, key=k_mod2)
    x2 = jax.random.normal(k_x2, (B2, Cin2, T2), dtype=jnp.float32)
    out2 = jax.block_until_ready(mod2(x2))
    ref2 = _reference_conv(x2, mod2.weight, mod2.bias, stride2, padding2)
    expected_len2 = (T2 + 2 * padding2 - K2) // stride2 + 1
    assert out2.shape == (B2, Cout2, expected_len2), out2.shape
    assert jnp.allclose(out2, ref2, atol=5e-2, rtol=5e-2), (
        float(jnp.max(jnp.abs(out2 - ref2))))

    print("KERNEL_OK")
</pallas_src>

<mosaic_0001>
module attributes {stable_mosaic.version = 11 : i64} {
  func.func @kernel(%arg0: i32, %arg1: i32, %arg2: memref<11x8x128xf32, #tpu.memory_space<vmem>>, %arg3: memref<11x16x8xf32, #tpu.memory_space<vmem>>, %arg4: memref<11x16x128xf32, #tpu.memory_space<vmem>>) attributes {dimension_semantics = [#tpu.dimension_semantics<parallel>, #tpu.dimension_semantics<parallel>], iteration_bounds = array<i64: 2, 1>, scalar_prefetch = 0 : i64, scratch_operands = 0 : i64, tpu.core_type = #tpu.core_type<tc>, window_params = [{transform_indices = @transform_0, window_bounds = array<i64: 11, 8, 128>}, {transform_indices = @transform_1, window_bounds = array<i64: 11, 16, 8>}, {transform_indices = @transform_2, window_bounds = array<i64: 11, 16, 128>}]} {
    %c0 = arith.constant 0 : index
    %c0_0 = arith.constant 0 : index
    %c0_1 = arith.constant 0 : index
    %0 = vector.load %arg2[%c0, %c0_0, %c0_1] : memref<11x8x128xf32, #tpu.memory_space<vmem>>, vector<11x8x128xf32>
    %c0_2 = arith.constant 0 : index
    %c0_3 = arith.constant 0 : index
    %c0_4 = arith.constant 0 : index
    %1 = vector.load %arg3[%c0_2, %c0_3, %c0_4] : memref<11x16x8xf32, #tpu.memory_space<vmem>>, vector<11x16x8xf32>
    %2 = vector.extract_strided_slice %1 {offsets = [0, 0, 0], sizes = [11, 16, 1], strides = [1, 1, 1]} : vector<11x16x8xf32> to vector<11x16x1xf32>
    %3 = vector.shape_cast %2 : vector<11x16x1xf32> to vector<11x16xf32>
    %4 = vector.shape_cast %3 : vector<11x16xf32> to vector<11x16x1xf32>
    %5 = vector.extract_strided_slice %0 {offsets = [0, 0, 0], sizes = [11, 1, 128], strides = [1, 1, 1]} : vector<11x8x128xf32> to vector<11x1x128xf32>
    %6 = vector.shape_cast %5 : vector<11x1x128xf32> to vector<11x128xf32>
    %7 = vector.shape_cast %6 : vector<11x128xf32> to vector<11x1x128xf32>
    %8 = vector.broadcast %4 : vector<11x16x1xf32> to vector<11x16x128xf32>
    %9 = vector.broadcast %7 : vector<11x1x128xf32> to vector<11x16x128xf32>
    %10 = arith.mulf %8, %9 : vector<11x16x128xf32>
    %11 = vector.extract_strided_slice %1 {offsets = [0, 0, 1], sizes = [11, 16, 1], strides = [1, 1, 1]} : vector<11x16x8xf32> to vector<11x16x1xf32>
    %12 = vector.shape_cast %11 : vector<11x16x1xf32> to vector<11x16xf32>
    %13 = vector.shape_cast %12 : vector<11x16xf32> to vector<11x16x1xf32>
    %14 = vector.extract_strided_slice %0 {offsets = [0, 1, 0], sizes = [11, 1, 128], strides = [1, 1, 1]} : vector<11x8x128xf32> to vector<11x1x128xf32>
    %15 = vector.shape_cast %14 : vector<11x1x128xf32> to vector<11x128xf32>
    %16 = vector.shape_cast %15 : vector<11x128xf32> to vector<11x1x128xf32>
    %17 = vector.broadcast %13 : vector<11x16x1xf32> to vector<11x16x128xf32>
    %18 = vector.broadcast %16 : vector<11x1x128xf32> to vector<11x16x128xf32>
    %19 = arith.mulf %17, %18 : vector<11x16x128xf32>
    %20 = arith.addf %10, %19 : vector<11x16x128xf32>
    %21 = vector.extract_strided_slice %1 {offsets = [0, 0, 2], sizes = [11, 16, 1], strides = [1, 1, 1]} : vector<11x16x8xf32> to vector<11x16x1xf32>
    %22 = vector.shape_cast %21 : vector<11x16x1xf32> to vector<11x16xf32>
    %23 = vector.shape_cast %22 : vector<11x16xf32> to vector<11x16x1xf32>
    %24 = vector.extract_strided_slice %0 {offsets = [0, 2, 0], sizes = [11, 1, 128], strides = [1, 1, 1]} : vector<11x8x128xf32> to vector<11x1x128xf32>
    %25 = vector.shape_cast %24 : vector<11x1x128xf32> to vector<11x128xf32>
    %26 = vector.shape_cast %25 : vector<11x128xf32> to vector<11x1x128xf32>
    %27 = vector.broadcast %23 : vector<11x16x1xf32> to vector<11x16x128xf32>
    %28 = vector.broadcast %26 : vector<11x1x128xf32> to vector<11x16x128xf32>
    %29 = arith.mulf %27, %28 : vector<11x16x128xf32>
    %30 = arith.addf %20, %29 : vector<11x16x128xf32>
    %31 = vector.extract_strided_slice %1 {offsets = [0, 0, 3], sizes = [11, 16, 1], strides = [1, 1, 1]} : vector<11x16x8xf32> to vector<11x16x1xf32>
    %32 = vector.shape_cast %31 : vector<11x16x1xf32> to vector<11x16xf32>
    %33 = vector.shape_cast %32 : vector<11x16xf32> to vector<11x16x1xf32>
    %34 = vector.extract_strided_slice %0 {offsets = [0, 3, 0], sizes = [11, 1, 128], strides = [1, 1, 1]} : vector<11x8x128xf32> to vector<11x1x128xf32>
    %35 = vector.shape_cast %34 : vector<11x1x128xf32> to vector<11x128xf32>
    %36 = vector.shape_cast %35 : vector<11x128xf32> to vector<11x1x128xf32>
    %37 = vector.broadcast %33 : vector<11x16x1xf32> to vector<11x16x128xf32>
    %38 = vector.broadcast %36 : vector<11x1x128xf32> to vector<11x16x128xf32>
    %39 = arith.mulf %37, %38 : vector<11x16x128xf32>
    %40 = arith.addf %30, %39 : vector<11x16x128xf32>
    %41 = vector.extract_strided_slice %1 {offsets = [0, 0, 4], sizes = [11, 16, 1], strides = [1, 1, 1]} : vector<11x16x8xf32> to vector<11x16x1xf32>
    %42 = vector.shape_cast %41 : vector<11x16x1xf32> to vector<11x16xf32>
    %43 = vector.shape_cast %42 : vector<11x16xf32> to vector<11x16x1xf32>
    %44 = vector.extract_strided_slice %0 {offsets = [0, 4, 0], sizes = [11, 1, 128], strides = [1, 1, 1]} : vector<11x8x128xf32> to vector<11x1x128xf32>
    %45 = vector.shape_cast %44 : vector<11x1x128xf32> to vector<11x128xf32>
    %46 = vector.shape_cast %45 : vector<11x128xf32> to vector<11x1x128xf32>
    %47 = vector.broadcast %43 : vector<11x16x1xf32> to vector<11x16x128xf32>
    %48 = vector.broadcast %46 : vector<11x1x128xf32> to vector<11x16x128xf32>
    %49 = arith.mulf %47, %48 : vector<11x16x128xf32>
    %50 = arith.addf %40, %49 : vector<11x16x128xf32>
    %51 = vector.extract_strided_slice %1 {offsets = [0, 0, 5], sizes = [11, 16, 1], strides = [1, 1, 1]} : vector<11x16x8xf32> to vector<11x16x1xf32>
    %52 = vector.shape_cast %51 : vector<11x16x1xf32> to vector<11x16xf32>
    %53 = vector.shape_cast %52 : vector<11x16xf32> to vector<11x16x1xf32>
    %54 = vector.extract_strided_slice %0 {offsets = [0, 5, 0], sizes = [11, 1, 128], strides = [1, 1, 1]} : vector<11x8x128xf32> to vector<11x1x128xf32>
    %55 = vector.shape_cast %54 : vector<11x1x128xf32> to vector<11x128xf32>
    %56 = vector.shape_cast %55 : vector<11x128xf32> to vector<11x1x128xf32>
    %57 = vector.broadcast %53 : vector<11x16x1xf32> to vector<11x16x128xf32>
    %58 = vector.broadcast %56 : vector<11x1x128xf32> to vector<11x16x128xf32>
    %59 = arith.mulf %57, %58 : vector<11x16x128xf32>
    %60 = arith.addf %50, %59 : vector<11x16x128xf32>
    %61 = vector.extract_strided_slice %1 {offsets = [0, 0, 6], sizes = [11, 16, 1], strides = [1, 1, 1]} : vector<11x16x8xf32> to vector<11x16x1xf32>
    %62 = vector.shape_cast %61 : vector<11x16x1xf32> to vector<11x16xf32>
    %63 = vector.shape_cast %62 : vector<11x16xf32> to vector<11x16x1xf32>
    %64 = vector.extract_strided_slice %0 {offsets = [0, 6, 0], sizes = [11, 1, 128], strides = [1, 1, 1]} : vector<11x8x128xf32> to vector<11x1x128xf32>
    %65 = vector.shape_cast %64 : vector<11x1x128xf32> to vector<11x128xf32>
    %66 = vector.shape_cast %65 : vector<11x128xf32> to vector<11x1x128xf32>
    %67 = vector.broadcast %63 : vector<11x16x1xf32> to vector<11x16x128xf32>
    %68 = vector.broadcast %66 : vector<11x1x128xf32> to vector<11x16x128xf32>
    %69 = arith.mulf %67, %68 : vector<11x16x128xf32>
    %70 = arith.addf %60, %69 : vector<11x16x128xf32>
    %71 = vector.extract_strided_slice %1 {offsets = [0, 0, 7], sizes = [11, 16, 1], strides = [1, 1, 1]} : vector<11x16x8xf32> to vector<11x16x1xf32>
    %72 = vector.shape_cast %71 : vector<11x16x1xf32> to vector<11x16xf32>
    %73 = vector.shape_cast %72 : vector<11x16xf32> to vector<11x16x1xf32>
    %74 = vector.extract_strided_slice %0 {offsets = [0, 7, 0], sizes = [11, 1, 128], strides = [1, 1, 1]} : vector<11x8x128xf32> to vector<11x1x128xf32>
    %75 = vector.shape_cast %74 : vector<11x1x128xf32> to vector<11x128xf32>
    %76 = vector.shape_cast %75 : vector<11x128xf32> to vector<11x1x128xf32>
    %77 = vector.broadcast %73 : vector<11x16x1xf32> to vector<11x16x128xf32>
    %78 = vector.broadcast %76 : vector<11x1x128xf32> to vector<11x16x128xf32>
    %79 = arith.mulf %77, %78 : vector<11x16x128xf32>
    %80 = arith.addf %70, %79 : vector<11x16x128xf32>
    %c0_5 = arith.constant 0 : index
    %c0_6 = arith.constant 0 : index
    %c0_7 = arith.constant 0 : index
    %81 = vector.load %arg4[%c0_5, %c0_6, %c0_7] : memref<11x16x128xf32, #tpu.memory_space<vmem>>, vector<11x16x128xf32>
    tpu.vector_store %arg4[%c0_5, %c0_6, %c0_7], %80 {strides = array<i32>} : memref<11x16x128xf32, #tpu.memory_space<vmem>>, vector<11x16x128xf32>,
    return
  }
  func.func @transform_0(%arg0: i32, %arg1: i32) -> (i32, i32, i32) {
    %c0_i32 = arith.constant 0 : i32
    %c0_i32_0 = arith.constant 0 : i32
    return %arg0, %c0_i32, %arg1 : i32, i32, i32
  }
  func.func @transform_1(%arg0: i32, %arg1: i32) -> (i32, i32, i32) {
    %c0_i32 = arith.constant 0 : i32
    %c0_i32_0 = arith.constant 0 : i32
    %c0_i32_1 = arith.constant 0 : i32
    return %arg0, %c0_i32, %c0_i32_0 : i32, i32, i32
  }
  func.func @transform_2(%arg0: i32, %arg1: i32) -> (i32, i32, i32) {
    %c0_i32 = arith.constant 0 : i32
    %c0_i32_0 = arith.constant 0 : i32
    return %arg0, %c0_i32, %arg1 : i32, i32, i32
  }
}

</mosaic_0001>

<bundles_post_ra>
// kernel: reverse.0
= control target key start
LH: loop header
LB: loop body
LE: loop exit
PB: predicated region body
PF: predicated region fallthrough
CT: control target
= control target key end

     0   :  { %v2_v0 = vlaneseq  ;;  %s158_s0 = inlined_call_operand.vmem [shape: f32[2,6,2,19], index: 0, kind: input, shape index: {}]   ;;  %s159_s1 = inlined_call_operand.vmem [shape: f32[2,6,2,19], index: 1, kind: output, shape index: {}]  }
   0x1   :  { %v42_v2 = vld [vmem:[%s158_s0 + $0x10] sm:$0xff]  ;;  %v38_v3 = vld [vmem:[%s158_s0] sm:$0xff]  ;;  %v44_v4 = vld [vmem:[%s158_s0 + $0x18] sm:$0xff] }
   0x2   :  { %v3_v1 = vsub.s32 18, %v2_v0  ;;  %v40_v5 = vld [vmem:[%s158_s0 + $0x8] sm:$0xff] }
   0x4   :  { %4 = vset.pattern.permute.xlu0 %v3_v1  ;;  %123 = vset.pattern.permute.xlu1 %v3_v1 }
   0x5   :  { %62 = vperm.xlu1 %123, %v42_v2   ;;  %50 = vperm.xlu0 %4, %v38_v3  }
   0x9   :  { %68 = vperm.xlu1 %123, %v44_v4   ;;  %56 = vperm.xlu0 %4, %v40_v5  }
  0x84   :  { %v63_v6 = vpop.permute.xlu1 %62  ;;  %v51_v7 = vpop.permute.xlu0 %50 }
  0x85   :  { %109 = vst [vmem:[%s159_s1 + $0x10] sm:$0xff] %v63_v6  ;;  %105 = vst [vmem:[%s159_s1] sm:$0xff] %v51_v7 }
  0x88   :  { %v69_v8 = vpop.permute.xlu1 %68  ;;  %v57_v9 = vpop.permute.xlu0 %56 }
  0x89   :  { %111 = vst [vmem:[%s159_s1 + $0x18] sm:$0xff] %v69_v8  ;;  %107 = vst [vmem:[%s159_s1 + $0x8] sm:$0xff] %v57_v9 }

// kernel: fft_conv1d.1
= control target key start
LH: loop header
LB: loop body
LE: loop exit
PB: predicated region body
PF: predicated region fallthrough
CT: control target
= control target key end

     0   :  { %s2348_s9 = smov 0   ;;  %s2350_s10 = smov 0   ;;  %s3628_s0 = inlined_call_operand.vmem [shape: f32[21,8,128], index: 0, kind: input, shape index: {}]   ;;  %s3629_s1 = inlined_call_operand.vmem [shape: f32[21,16,8], index: 1, kind: input, shape index: {}]   ;;  %s3630_s2 = inlined_call_operand.vmem [shape: f32[21,16,128], index: 2, kind: output, shape index: {}]  }
   0x1   :  { %s2352_s11 = smov 0   ;;  %s2354_s12 = smov 0  }
   0x2   :  { %s2356_s13 = smov 0  }
   0x3 LB: > { %s2034_s14 = sadd.s32 4294967295, %s2291_s13   ;;  %s24_s15 = sadd.s32 1, %s2287_s12  ;;  %s2291_s13 = sphi %s2356_s13, %s12_s13   ;;  %s2287_s12 = sphi %s2354_s12, %s3888_s12   ;;  %s2283_s11 = sphi %s2352_s11, %s3887_s11   ;;  %s2279_s10 = sphi %s2350_s10, %s3886_s10   ;;  %s2275_s9 = sphi %s2348_s9, %s3885_s9  }
   0x4   : > { %p26_p0 = scmp.ge.s32.totalorder %s24_s15, 2  ;;  %s87_s16 = sadd.s32 1, %s2279_s10 }
   0x5   : > { %p97_p1 = scmp.ne.s32.totalorder %s2279_s10, %s2275_s9  ;;  %p98_p2 = scmp.eq.s32.totalorder %s2034_s14, 1 }
   0x6   : > { %s3890_s15 = smov (%p26_p0, %s24_s15), 0  ;;  %p2038_p4 = scmp.ge.s32.totalorder %s2291_s13, 1 }
   0x7   : > { %p2380_p3 = por %p98_p2, %p97_p1  ;;  %s82_s18 = ssub.s32 %s2287_s12, %s3890_s15 }
   0x8   : > { %p162_p5 = scmp.lt.s32.totalorder %s2291_s13, 3  ;;  %p85_p6 = scmp.eq.s32.totalorder %s82_s18, 0 }
   0xa   : > { %p163_p7 = pnand %p2038_p4, %p162_p5 }
   0xb   : > { %s2389_s19 = scalar_select %p85_p6, %s2279_s10, %s87_s16  }
   0xc   : > { %166 = sbr.rel (%p163_p7) target bundleno = 591 (0x24f), region = 28 }
  0x13   : > { %s2392_s20 = smul.u32 11, %s2283_s11  ;;  %v2325_v0 = vmov 0   ;;  %v2326_v23 = vmov 1   ;;  %v2327_v24 = vmov 2   ;;  %v2328_v27 = vmov 3   ;;  %s198_s30 = sand.u32 1, %s2275_s9  }
  0x14   : > { %2177 = vset.pattern.permute.xlu1 %v2325_v0  ;;  %2176 = vset.pattern.permute.xlu0 %v2325_v0  ;;  %v2329_v50 = vmov 4   ;;  %s2062_s3 = smul.u32 176, %s198_s30 }
  0x15   : > { %p206_p8 = scmp.lt.s32.totalorder %s2392_s20, 20  ;;  %s1712_s5 = ssub.s32 (%p2380_p3), 21, %s2392_s20 }
  0x16   : > { %s3443_s4 = scalar_lea.vmem [#allocation2], %s2062_s3   ;;  %s2061_s6 = smul.u32 (%p2380_p3), 176, %s2283_s11 }
  0x17   : > { %s2396_s21 = scalar_select %p206_p8, %s2392_s20, 20 }
  0x18   : > { %p1713_p9 = scmp.lt.s32.totalorder (%p2380_p3), %s1712_s5, 11  ;;  %s3516_s9 = scalar_lea.vmem (%p2380_p3), %s3630_s2, %s2061_s6  }
  0x19   : > { %s2057_s22 = sshll.u32 %s2396_s21, 4  ;;  %s2039_s26 = sshll.u32 %s2396_s21, 3 }
  0x1a   : > { %s2402_s25 = scalar_lea.vmem %s3629_s1, %s2057_s22  ;;  %s2740_s29 = scalar_lea.vmem %s3628_s0, %s2039_s26 }
  0x1b   : > { %v2405_v1 = vld [vmem:[%s2402_s25 + $0x10] sm:$0xff]  ;;  %v2408_v2 = vld [vmem:[%s2402_s25] sm:$0xff]  ;;  %v2413_v3 = vld [vmem:[%s2402_s25 + $0x18] sm:$0xff] }
  0x1c   : > { %286 = vperm.xlu1 %2177, %v2405_v1   ;;  %276 = vperm.xlu0 %2176, %v2408_v2   ;;  %v2416_v4 = vld [vmem:[%s2402_s25 + $0x8] sm:$0xff]  ;;  %v2424_v6 = vld [vmem:[%s2402_s25 + $0x20] sm:$0xff]  ;;  %v2429_v7 = vld [vmem:[%s2402_s25 + $0x38] sm:$0xff] }
  0x1d   : > { %v2421_v5 = vld [vmem:[%s2402_s25 + $0x28] sm:$0xff]  ;;  %3684 = vst [vmem:[#allocation4_spill] sm:$0xff] %v2429_v7  ;;  %v2432_v8 = vld [vmem:[%s2402_s25 + $0x30] sm:$0xff]  ;;  %v2440_v10 = vld [vmem:[%s2402_s25 + $0x40] sm:$0xff] }
  0x1e   : > { %3683 = vst [vmem:[#allocation3_spill] sm:$0xff] %v2421_v5  ;;  %v2437_v9 = vld [vmem:[%s2402_s25 + $0x48] sm:$0xff]  ;;  %v2445_v11 = vld [vmem:[%s2402_s25 + $0x58] sm:$0xff]  ;;  %v2448_v12 = vld [vmem:[%s2402_s25 + $0x50] sm:$0xff] }
  0x1f   : > { %3685 = vst [vmem:[#allocation5_spill] sm:$0xff] %v2437_v9  ;;  %3686 = vst [vmem:[#allocation6_spill] sm:$0xff] %v2445_v11  ;;  %v2453_v13 = vld [vmem:[%s2402_s25 + $0x68] sm:$0xff]  ;;  %v2456_v14 = vld [vmem:[%s2402_s25 + $0x60] sm:$0xff] }
  0x20   : > { %291 = vperm.xlu1 %2177, %v2413_v3   ;;  %281 = vperm.xlu0 %2176, %v2416_v4   ;;  %3687 = vst [vmem:[#allocation7_spill] sm:$0xff] %v2453_v13  ;;  %v2461_v15 = vld [vmem:[%s2402_s25 + $0x78] sm:$0xff]  ;;  %v2464_v16 = vld [vmem:[%s2402_s25 + $0x70] sm:$0xff]  ;;  %v2469_v17 = vld [vmem:[%s2402_s25 + $0x88] sm:$0xff] }
  0x21   : > { %3688 = vst [vmem:[#allocation8_spill] sm:$0xff] %v2461_v15  ;;  %3689 = vst [vmem:[#allocation9_spill] sm:$0xff] %v2469_v17  ;;  %v2472_v18 = vld [vmem:[%s2402_s25 + $0x80] sm:$0xff]  ;;  %v2477_v19 = vld [vmem:[%s2402_s25 + $0x98] sm:$0xff] }
  0x22   : > { %3690 = vst [vmem:[#allocation10_spill] sm:$0xff] %v2472_v18  ;;  %3691 = vst [vmem:[#allocation11_spill] sm:$0xff] %v2477_v19  ;;  %v2480_v20 = vld [vmem:[%s2402_s25 + $0x90] sm:$0xff]  ;;  %v2485_v21 = vld [vmem:[%s2402_s25 + $0xa8] sm:$0xff] }
  0x23   : > { %3692 = vst [vmem:[#allocation12_spill] sm:$0xff] %v2480_v20  ;;  %3693 = vst [vmem:[#allocation13_spill] sm:$0xff] %v2485_v21  ;;  %v2488_v22 = vld [vmem:[%s2402_s25 + $0xa0] sm:$0xff] }
  0x24   : > { %301 = vperm.xlu1 %2177, %v2421_v5   ;;  %296 = vperm.xlu0 %2176, %v2424_v6   ;;  %3694 = vst [vmem:[#allocation14_spill] sm:$0xff] %v2488_v22 }
  0x28   : > { %311 = vperm.xlu1 %2177, %v2429_v7   ;;  %306 = vperm.xlu0 %2176, %v2432_v8  }
  0x2c   : > { %321 = vperm.xlu1 %2177, %v2437_v9   ;;  %316 = vperm.xlu0 %2176, %v2440_v10  }
  0x30   : > { %331 = vperm.xlu1 %2177, %v2445_v11   ;;  %326 = vperm.xlu0 %2176, %v2448_v12  }
  0x34   : > { %341 = vperm.xlu1 %2177, %v2453_v13   ;;  %336 = vperm.xlu0 %2176, %v2456_v14  }
  0x38   : > { %351 = vperm.xlu1 %2177, %v2461_v15   ;;  %346 = vperm.xlu0 %2176, %v2464_v16  }
  0x3c   : > { %361 = vperm.xlu1 %2177, %v2469_v17   ;;  %356 = vperm.xlu0 %2176, %v2472_v18  }
  0x40   : > { %371 = vperm.xlu1 %2177, %v2477_v19   ;;  %366 = vperm.xlu0 %2176, %v2480_v20  }
  0x44   : > { %381 = vperm.xlu1 %2177, %v2485_v21   ;;  %376 = vperm.xlu0 %2176, %v2488_v22  }
  0x48   : > { %2179 = vset.pattern.permute.xlu1 %v2326_v23  ;;  %2178 = vset.pattern.permute.xlu0 %v2326_v23 }
  0x49   : > { %455 = vperm.xlu1 %2179, %v2416_v4   ;;  %451 = vperm.xlu0 %2178, %v2408_v2  }
  0x4d   : > { %459 = vperm.xlu1 %2179, %v2405_v1   ;;  %463 = vperm.xlu0 %2178, %v2413_v3  }
  0x51   : > { %467 = vperm.xlu1 %2179, %v2424_v6   ;;  %471 = vperm.xlu0 %2178, %v2421_v5  }
  0x55   : > { %475 = vperm.xlu1 %2179, %v2432_v8   ;;  %479 = vperm.xlu0 %2178, %v2429_v7  }
  0x59   : > { %483 = vperm.xlu1 %2179, %v2440_v10   ;;  %487 = vperm.xlu0 %2178, %v2437_v9  }
  0x5d   : > { %491 = vperm.xlu1 %2179, %v2448_v12   ;;  %495 = vperm.xlu0 %2178, %v2445_v11  }
  0x61   : > { %499 = vperm.xlu1 %2179, %v2456_v14   ;;  %503 = vperm.xlu0 %2178, %v2453_v13  }
  0x65   : > { %507 = vperm.xlu1 %2179, %v2464_v16   ;;  %511 = vperm.xlu0 %2178, %v2461_v15  }
  0x69   : > { %515 = vperm.xlu1 %2179, %v2472_v18   ;;  %519 = vperm.xlu0 %2178, %v2469_v17  }
  0x6d   : > { %523 = vperm.xlu1 %2179, %v2480_v20   ;;  %527 = vperm.xlu0 %2178, %v2477_v19  }
  0x71   : > { %531 = vperm.xlu1 %2179, %v2488_v22   ;;  %535 = vperm.xlu0 %2178, %v2485_v21  }
  0x75   : > { %2180 = vset.pattern.permute.xlu1 %v2327_v24  ;;  %2181 = vset.pattern.permute.xlu0 %v2327_v24 }
  0x76   : > { %627 = vperm.xlu1 %2180, %v2408_v2   ;;  %631 = vperm.xlu0 %2181, %v2416_v4  }
  0x7a   : > { %635 = vperm.xlu1 %2180, %v2405_v1   ;;  %643 = vperm.xlu0 %2181, %v2424_v6  }
  0x7e   : > { %639 = vperm.xlu1 %2180, %v2413_v3   ;;  %651 = vperm.xlu0 %2181, %v2432_v8  }
  0x82   : > { %647 = vperm.xlu1 %2180, %v2421_v5   ;;  %659 = vperm.xlu0 %2181, %v2440_v10  }
  0x86   : > { %655 = vperm.xlu1 %2180, %v2429_v7   ;;  %667 = vperm.xlu0 %2181, %v2448_v12  }
  0x8a   : > { %663 = vperm.xlu1 %2180, %v2437_v9   ;;  %675 = vperm.xlu0 %2181, %v2456_v14  }
  0x8e   : > { %671 = vperm.xlu1 %2180, %v2445_v11   ;;  %683 = vperm.xlu0 %2181, %v2464_v16  }
  0x92   : > { %679 = vperm.xlu1 %2180, %v2453_v13   ;;  %691 = vperm.xlu0 %2181, %v2472_v18  }
  0x96   : > { %687 = vperm.xlu1 %2180, %v2461_v15   ;;  %699 = vperm.xlu0 %2181, %v2480_v20  }
  0x9a   : > { %695 = vperm.xlu1 %2180, %v2469_v17   ;;  %707 = vperm.xlu0 %2181, %v2488_v22  }
  0x9b   : > { %v2534_v25 = vpop.permute.xlu1 %286  ;;  %v2536_v26 = vpop.permute.xlu0 %276 }
  0x9e   : > { %703 = vperm.xlu1 %2180, %v2477_v19   ;;  %2182 = vset.pattern.permute.xlu0 %v2328_v27 }
  0x9f   : > { %v2539_v28 = vpop.permute.xlu1 %291  ;;  %803 = vperm.xlu0 %2182, %v2408_v2   ;;  %v2542_v29 = vpop.permute.xlu0 %281 }
  0xa2   : > { %711 = vperm.xlu1 %2180, %v2485_v21  }
  0xa3   : > { %v2545_v30 = vpop.permute.xlu1 %301  ;;  %815 = vperm.xlu0 %2182, %v2413_v3   ;;  %v2548_v31 = vpop.permute.xlu0 %296 }
  0xa6   : > { %2183 = vset.pattern.permute.xlu1 %v2328_v27 }
  0xa7   : > { %v2550_v32 = vpop.permute.xlu1 %311  ;;  %807 = vperm.xlu1 %2183, %v2416_v4   ;;  %823 = vperm.xlu0 %2182, %v2421_v5   ;;  %v2554_v33 = vpop.permute.xlu0 %306 }
  0xab   : > { %v2556_v34 = vpop.permute.xlu1 %321  ;;  %811 = vperm.xlu1 %2183, %v2405_v1   ;;  %831 = vperm.xlu0 %2182, %v2429_v7   ;;  %v2560_v35 = vpop.permute.xlu0 %316 }
  0xac   : > { %3695 = vst [vmem:[#allocation15_spill] sm:$0xff] %v2560_v35 }
  0xaf   : > { %v2562_v36 = vpop.permute.xlu1 %331  ;;  %819 = vperm.xlu1 %2183, %v2424_v6   ;;  %839 = vperm.xlu0 %2182, %v2437_v9   ;;  %v2566_v37 = vpop.permute.xlu0 %326 }
  0xb0   : > { %3696 = vst [vmem:[#allocation16_spill] sm:$0xff] %v2566_v37 }
  0xb3   : > { %v2568_v38 = vpop.permute.xlu1 %341  ;;  %827 = vperm.xlu1 %2183, %v2432_v8   ;;  %847 = vperm.xlu0 %2182, %v2445_v11   ;;  %v2572_v39 = vpop.permute.xlu0 %336 }
  0xb4   : > { %3697 = vst [vmem:[#allocation17_spill] sm:$0xff] %v2572_v39 }
  0xb7   : > { %v2574_v40 = vpop.permute.xlu1 %351  ;;  %835 = vperm.xlu1 %2183, %v2440_v10   ;;  %855 = vperm.xlu0 %2182, %v2453_v13   ;;  %v2578_v41 = vpop.permute.xlu0 %346 }
  0xb8   : > { %3698 = vst [vmem:[#allocation18_spill] sm:$0xff] %v2578_v41 }
  0xbb   : > { %v2580_v42 = vpop.permute.xlu1 %361  ;;  %843 = vperm.xlu1 %2183, %v2448_v12   ;;  %863 = vperm.xlu0 %2182, %v2461_v15   ;;  %v2584_v43 = vpop.permute.xlu0 %356 }
  0xbc   : > { %3699 = vst [vmem:[#allocation19_spill] sm:$0xff] %v2584_v43 }
  0xbf   : > { %v2586_v44 = vpop.permute.xlu1 %371  ;;  %851 = vperm.xlu1 %2183, %v2456_v14   ;;  %871 = vperm.xlu0 %2182, %v2469_v17   ;;  %v2590_v45 = vpop.permute.xlu0 %366 }
  0xc0   : > { %3700 = vst [vmem:[#allocation20_spill] sm:$0xff] %v2586_v44  ;;  %3701 = vst [vmem:[#allocation21_spill] sm:$0xff] %v2590_v45 }
  0xc3   : > { %v2592_v46 = vpop.permute.xlu1 %381  ;;  %859 = vperm.xlu1 %2183, %v2464_v16   ;;  %879 = vperm.xlu0 %2182, %v2477_v19   ;;  %v2596_v47 = vpop.permute.xlu0 %376 }
  0xc4   : > { %3702 = vst [vmem:[#allocation22_spill] sm:$0xff] %v2592_v46  ;;  %3703 = vst [vmem:[#allocation23_spill] sm:$0xff] %v2596_v47  ;;  %v2799_v46 = vld [vmem:[%s2740_s29 + $0x48] sm:$0xff] }
  0xc5   : > { %3750 = vst [vmem:[#allocation70_spill] sm:$0xff] %v2799_v46 }
  0xc7   : > { %867 = vperm.xlu1 %2183, %v2472_v18   ;;  %887 = vperm.xlu0 %2182, %v2485_v21  }
  0xc8   : > { %v2600_v48 = vpop.permute.xlu1 %455  ;;  %v2602_v49 = vpop.permute.xlu0 %451 }
  0xc9   : > { %3704 = vst [vmem:[#allocation24_spill] sm:$0xff] %v2600_v48  ;;  %3705 = vst [vmem:[#allocation25_spill] sm:$0xff] %v2602_v49  ;;  %v2775_v49 = vld [vmem:[%s2740_s29 + $0x28] sm:$0xff] }
  0xca   : > { %3746 = vst [vmem:[#allocation66_spill] sm:$0xff] %v2775_v49 }
  0xcb   : > { %875 = vperm.xlu1 %2183, %v2480_v20   ;;  %2185 = vset.pattern.permute.xlu0 %v2329_v50 }
  0xcc   : > { %v2605_v51 = vpop.permute.xlu1 %459  ;;  %983 = vperm.xlu0 %2185, %v2416_v4   ;;  %v2608_v52 = vpop.permute.xlu0 %463 }
  0xcd   : > { %3706 = vst [vmem:[#allocation26_spill] sm:$0xff] %v2605_v51  ;;  %3707 = vst [vmem:[#allocation27_spill] sm:$0xff] %v2608_v52 }
  0xcf   : > { %883 = vperm.xlu1 %2183, %v2488_v22  }
  0xd0   : > { %v2611_v53 = vpop.permute.xlu1 %467  ;;  %995 = vperm.xlu0 %2185, %v2424_v6   ;;  %v2614_v54 = vpop.permute.xlu0 %471 }
  0xd1   : > { %3708 = vst [vmem:[#allocation28_spill] sm:$0xff] %v2611_v53  ;;  %3709 = vst [vmem:[#allocation29_spill] sm:$0xff] %v2614_v54  ;;  %v3638_v53 = vmov 6  }
  0xd3   : > { %2184 = vset.pattern.permute.xlu1 %v2329_v50 }
  0xd4   : > { %v2616_v55 = vpop.permute.xlu1 %475  ;;  %979 = vperm.xlu1 %2184, %v2408_v2   ;;  %1003 = vperm.xlu0 %2185, %v2432_v8   ;;  %v2620_v56 = vpop.permute.xlu0 %479 }
  0xd5   : > { %3710 = vst [vmem:[#allocation30_spill] sm:$0xff] %v2616_v55  ;;  %3711 = vst [vmem:[#allocation31_spill] sm:$0xff] %v2620_v56  ;;  %v2330_v56 = vmov 5  }
  0xd8   : > { %v2622_v57 = vpop.permute.xlu1 %483  ;;  %987 = vperm.xlu1 %2184, %v2405_v1   ;;  %1011 = vperm.xlu0 %2185, %v2440_v10   ;;  %v2626_v58 = vpop.permute.xlu0 %487 }
  0xd9   : > { %3712 = vst [vmem:[#allocation32_spill] sm:$0xff] %v2622_v57 }
  0xdc   : > { %v2628_v59 = vpop.permute.xlu1 %491  ;;  %991 = vperm.xlu1 %2184, %v2413_v3   ;;  %1019 = vperm.xlu0 %2185, %v2448_v12   ;;  %v2632_v60 = vpop.permute.xlu0 %495 }
  0xdd   : > { %3713 = vst [vmem:[#allocation33_spill] sm:$0xff] %v2628_v59 }
  0xe0   : > { %v2634_v61 = vpop.permute.xlu1 %499  ;;  %999 = vperm.xlu1 %2184, %v2421_v5   ;;  %1027 = vperm.xlu0 %2185, %v2456_v14   ;;  %v2638_v62 = vpop.permute.xlu0 %503 }
  0xe1   : > { %3714 = vst [vmem:[#allocation34_spill] sm:$0xff] %v2634_v61 }
  0xe4   : > { %v2640_v63 = vpop.permute.xlu1 %507  ;;  %1007 = vperm.xlu1 %2184, %v2429_v7   ;;  %1035 = vperm.xlu0 %2185, %v2464_v16   ;;  %v2644_v0 = vpop.permute.xlu0 %511 }
  0xe5   : > { %3715 = vst [vmem:[#allocation35_spill] sm:$0xff] %v2640_v63 }
  0xe8   : > { %v2646_v23 = vpop.permute.xlu1 %515  ;;  %1015 = vperm.xlu1 %2184, %v2437_v9   ;;  %1043 = vperm.xlu0 %2185, %v2472_v18   ;;  %v2650_v24 = vpop.permute.xlu0 %519 }
  0xe9   : > { %3716 = vst [vmem:[#allocation36_spill] sm:$0xff] %v2646_v23  ;;  %v2802_v23 = vld [vmem:[%s2740_s29 + $0x50] sm:$0xff] }
  0xea   : > { %3751 = vst [vmem:[#allocation71_spill] sm:$0xff] %v2802_v23 }
  0xec   : > { %v2652_v27 = vpop.permute.xlu1 %523  ;;  %1023 = vperm.xlu1 %2184, %v2445_v11   ;;  %1051 = vperm.xlu0 %2185, %v2480_v20   ;;  %v2656_v50 = vpop.permute.xlu0 %527 }
  0xed   : > { %3717 = vst [vmem:[#allocation37_spill] sm:$0xff] %v2652_v27  ;;  %3718 = vst [vmem:[#allocation38_spill] sm:$0xff] %v2656_v50  ;;  %v2757_v27 = vld [vmem:[%s2740_s29 + $0x10] sm:$0xff] }
  0xf0   : > { %v2658_v41 = vpop.permute.xlu1 %531  ;;  %1031 = vperm.xlu1 %2184, %v2453_v13   ;;  %1059 = vperm.xlu0 %2185, %v2488_v22   ;;  %v2662_v63 = vpop.permute.xlu0 %535 }
  0xf1   : > { %3719 = vst [vmem:[#allocation39_spill] sm:$0xff] %v2658_v41  ;;  %3720 = vst [vmem:[#allocation40_spill] sm:$0xff] %v2662_v63 }
  0xf4   : > { %1039 = vperm.xlu1 %2184, %v2461_v15   ;;  %2186 = vset.pattern.permute.xlu0 %v2330_v56 }
  0xf5   : > { %v2665_v61 = vpop.permute.xlu1 %627  ;;  %1155 = vperm.xlu0 %2186, %v2408_v2   ;;  %v2668_v59 = vpop.permute.xlu0 %631 }
  0xf6   : > { %3721 = vst [vmem:[#allocation41_spill] sm:$0xff] %v2665_v61  ;;  %3722 = vst [vmem:[#allocation42_spill] sm:$0xff] %v2668_v59 }
  0xf8   : > { %1047 = vperm.xlu1 %2184, %v2469_v17  }
  0xf9   : > { %v2671_v57 = vpop.permute.xlu1 %635  ;;  %1167 = vperm.xlu0 %2186, %v2413_v3   ;;  %v2674_v54 = vpop.permute.xlu0 %643 }
  0xfa   : > { %3723 = vst [vmem:[#allocation43_spill] sm:$0xff] %v2671_v57  ;;  %3724 = vst [vmem:[#allocation44_spill] sm:$0xff] %v2674_v54  ;;  %v384_v54 = vlaneseq }
  0xfc   : > { %1055 = vperm.xlu1 %2184, %v2477_v19  }
  0xfd   : > { %v2677_v55 = vpop.permute.xlu1 %639  ;;  %1175 = vperm.xlu0 %2186, %v2421_v5   ;;  %v2680_v41 = vpop.permute.xlu0 %651 }
  0xfe   : > { %3725 = vst [vmem:[#allocation45_spill] sm:$0xff] %v2677_v55  ;;  %3726 = vst [vmem:[#allocation46_spill] sm:$0xff] %v2680_v41 }
 0x100   : > { %1063 = vperm.xlu1 %2184, %v2485_v21  }
 0x101   : > { %v2683_v61 = vpop.permute.xlu1 %647  ;;  %1183 = vperm.xlu0 %2186, %v2429_v7   ;;  %v2686_v59 = vpop.permute.xlu0 %659  ;;  %v2778_v7 = vld [vmem:[%s2740_s29 + $0x30] sm:$0xff] }
 0x102   : > { %3727 = vst [vmem:[#allocation47_spill] sm:$0xff] %v2683_v61  ;;  %3728 = vst [vmem:[#allocation48_spill] sm:$0xff] %v2686_v59 }
 0x103   : > { %3747 = vst [vmem:[#allocation67_spill] sm:$0xff] %v2778_v7 }
 0x104   : > { %2187 = vset.pattern.permute.xlu1 %v2330_v56 }
 0x105   : > { %1159 = vperm.xlu1 %2187, %v2416_v4   ;;  %v2689_v57 = vpop.permute.xlu1 %655  ;;  %1191 = vperm.xlu0 %2186, %v2437_v9   ;;  %v2692_v55 = vpop.permute.xlu0 %667 }
 0x106   : > { %3729 = vst [vmem:[#allocation49_spill] sm:$0xff] %v2689_v57  ;;  %3730 = vst [vmem:[#allocation50_spill] sm:$0xff] %v2692_v55 }
 0x109   : > { %1163 = vperm.xlu1 %2187, %v2405_v1   ;;  %v2695_v41 = vpop.permute.xlu1 %663  ;;  %1199 = vperm.xlu0 %2186, %v2445_v11   ;;  %v2698_v61 = vpop.permute.xlu0 %675 }
 0x10a   : > { %3731 = vst [vmem:[#allocation51_spill] sm:$0xff] %v2698_v61 }
 0x10d   : > { %1171 = vperm.xlu1 %2187, %v2424_v6   ;;  %v2701_v59 = vpop.permute.xlu1 %671  ;;  %1207 = vperm.xlu0 %2186, %v2453_v13   ;;  %v2704_v56 = vpop.permute.xlu0 %683 }
 0x10e   : > { %3732 = vst [vmem:[#allocation52_spill] sm:$0xff] %v2704_v56 }
 0x111   : > { %1179 = vperm.xlu1 %2187, %v2432_v8   ;;  %v2707_v57 = vpop.permute.xlu1 %679  ;;  %1215 = vperm.xlu0 %2186, %v2461_v15   ;;  %v2710_v55 = vpop.permute.xlu0 %691 }
 0x112   : > { %3733 = vst [vmem:[#allocation53_spill] sm:$0xff] %v2710_v55  ;;  %v2781_v55 = vld [vmem:[%s2740_s29 + $0x38] sm:$0xff] }
 0x113   : > { %3748 = vst [vmem:[#allocation68_spill] sm:$0xff] %v2781_v55 }
 0x115   : > { %1187 = vperm.xlu1 %2187, %v2440_v10   ;;  %v2713_v61 = vpop.permute.xlu1 %687  ;;  %1223 = vperm.xlu0 %2186, %v2469_v17   ;;  %v2716_v11 = vpop.permute.xlu0 %699  ;;  %v2731_v17 = vshrl.u32 %v384_v54, 7 }
 0x116   : > { %3734 = vst [vmem:[#allocation54_spill] sm:$0xff] %v2716_v11 }
 0x117   : > { %3738 = vst [vmem:[#allocation58_spill] sm:$0xff] %v2731_v17  ;;  %v2784_v47 = vsub.s32 2, %v2731_v17 }
 0x119   : > { %1195 = vperm.xlu1 %2187, %v2448_v12   ;;  %v2719_v56 = vpop.permute.xlu1 %695  ;;  %1231 = vperm.xlu0 %2186, %v2477_v19   ;;  %v2722_v13 = vpop.permute.xlu0 %707  ;;  %v2748_v19 = vld [vmem:[%s2740_s29 + $0x20] sm:$0xff] }
 0x11a   : > { %3735 = vst [vmem:[#allocation55_spill] sm:$0xff] %v2722_v13  ;;  %3741 = vst [vmem:[#allocation61_spill] sm:$0xff] %v2748_v19  ;;  %v2754_v13 = vld [vmem:[%s2740_s29] sm:$0xff] }
 0x11b   : > { %3742 = vst [vmem:[#allocation62_spill] sm:$0xff] %v2754_v13 }
 0x11d   : > { %1203 = vperm.xlu1 %2187, %v2456_v14   ;;  %v2725_v15 = vpop.permute.xlu1 %703  ;;  %1239 = vperm.xlu0 %2186, %v2485_v21   ;;  %v540_v21 = vsub.s32 1, %v2731_v17 }
 0x11e   : > { %3736 = vst [vmem:[#allocation56_spill] sm:$0xff] %v2725_v15  ;;  %v2728_v9 = vpop.permute.xlu0 %803  ;;  %v2811_v15 = vrot.slane %v2748_v19, %v2784_v47 }
 0x11f   : > { %3737 = vst [vmem:[#allocation57_spill] sm:$0xff] %v2728_v9  ;;  %v2751_v9 = vld [vmem:[%s2740_s29 + $0x8] sm:$0xff]  ;;  %v2807_v45 = vrot.slane %v2775_v49, %v540_v21 }
 0x120   : > { %3753 = vst [vmem:[#allocation73_spill] sm:$0xff] %v2811_v15  ;;  %v767_v50 = vmul.f32 %v2811_v15, %v2695_v41  ;;  %v2860_v15 = vrot.slane %v2778_v7, %v540_v21 }
 0x121   : > { %1211 = vperm.xlu1 %2187, %v2464_v16   ;;  %v2734_v11 = vpop.permute.xlu1 %711  ;;  %2189 = vset.pattern.permute.xlu0 %v3638_v53  ;;  %v386_v53 = vsub.s32 0, %v2731_v17  ;;  %3752 = vst [vmem:[#allocation72_spill] sm:$0xff] %v2807_v45  ;;  %v593_v41 = vmul.f32 %v2807_v45, %v2632_v60 }
 0x122   : > { %3739 = vst [vmem:[#allocation59_spill] sm:$0xff] %v2734_v11  ;;  %1335 = vperm.xlu0 %2189, %v2416_v4   ;;  %v2743_v54 = vpop.permute.xlu0 %815  ;;  %v2760_v4 = vrot.slane %v2748_v19, %v540_v21  ;;  %3760 = vst [vmem:[#allocation80_spill] sm:$0xff] %v2860_v15 }
 0x123   : > { %3740 = vst [vmem:[#allocation60_spill] sm:$0xff] %v2743_v54  ;;  %v2764_v54 = vld [vmem:[%s2740_s29 + $0x18] sm:$0xff]  ;;  %v2772_v11 = vrot.slane %v2748_v19, %v386_v53  ;;  %v2787_v63 = vrot.slane %v2751_v9, %v386_v53  ;;  %v2821_v44 = vrot.slane %v2775_v49, %v386_v53  ;;  %v2846_v35 = vrot.slane %v2799_v46, %v386_v53 }
 0x124   : > { %3743 = vst [vmem:[#allocation63_spill] sm:$0xff] %v2760_v4  ;;  %v591_v48 = vmul.f32 %v2760_v4, %v2626_v58  ;;  %v2818_v5 = vrot.slane %v2764_v54, %v386_v53  ;;  %v2824_v58 = vrot.slane %v2778_v7, %v386_v53  ;;  %v2827_v4 = vrot.slane %v2781_v55, %v386_v53 }
 0x125   : > { %1219 = vperm.xlu1 %2187, %v2472_v18   ;;  %v2814_v18 = vsub.s32 3, %v2731_v17 }
 0x126   : > { %v2766_v52 = vpop.permute.xlu1 %807  ;;  %1347 = vperm.xlu0 %2189, %v2424_v6   ;;  %v2769_v51 = vpop.permute.xlu0 %823  ;;  %v2793_v6 = vrot.slane %v2757_v27, %v386_v53  ;;  %3754 = vst [vmem:[#allocation74_spill] sm:$0xff] %v2827_v4 }
 0x127   : > { %3744 = vst [vmem:[#allocation64_spill] sm:$0xff] %v2766_v52  ;;  %3745 = vst [vmem:[#allocation65_spill] sm:$0xff] %v2769_v51  ;;  %v2790_v52 = vrot.slane %v2754_v13, %v386_v53  ;;  %v2796_v51 = vld [vmem:[%s2740_s29 + $0x40] sm:$0xff]  ;;  %v2843_v37 = vrot.slane %v2748_v19, %v2814_v18  ;;  %v2864_v19 = vrot.slane %v2775_v49, %v2784_v47 }
 0x128   : > { %3749 = vst [vmem:[#allocation69_spill] sm:$0xff] %v2796_v51  ;;  %v2837_v39 = vrot.slane %v2796_v51, %v386_v53 }
 0x129   : > { %1227 = vperm.xlu1 %2187, %v2480_v20   ;;  %v437_v20 = vmul.f32 %v2772_v11, %v2556_v34  ;;  %v2855_v34 = vrot.slane %v2751_v9, %v540_v21  ;;  %3761 = vst [vmem:[#allocation81_spill] sm:$0xff] %v2864_v19 }
 0x12a   : > { %v2829_v43 = vpop.permute.xlu1 %811  ;;  %1355 = vperm.xlu0 %2189, %v2432_v8   ;;  %v2832_v17 = vpop.permute.xlu0 %831  ;;  %v2849_v8 = vrot.slane %v2802_v23, %v386_v53  ;;  %v439_v53 = vmul.f32 %v2821_v44, %v2562_v36 }
 0x12b   : > { %3755 = vst [vmem:[#allocation75_spill] sm:$0xff] %v2829_v43  ;;  %3756 = vst [vmem:[#allocation76_spill] sm:$0xff] %v2832_v17  ;;  %v2852_v17 = vrot.slane %v2754_v13, %v540_v21  ;;  %v613_v43 = vadd.f32 %v591_v48, %v437_v20  ;;  %v2873_v20 = vrot.slane %v2764_v54, %v540_v21 }
 0x12c   : > { %3757 = vst [vmem:[#allocation77_spill] sm:$0xff] %v2849_v8  ;;  %3759 = vst [vmem:[#allocation79_spill] sm:$0xff] %v2855_v34  ;;  %v2870_v8 = vrot.slane %v2757_v27, %v540_v21  ;;  %v2876_v48 = vrot.slane %v2781_v55, %v540_v21 }
 0x12d   : > { %3758 = vst [vmem:[#allocation78_spill] sm:$0xff] %v2852_v17  ;;  %1235 = vperm.xlu1 %2187, %v2488_v22   ;;  %3763 = vst [vmem:[#allocation83_spill] sm:$0xff] %v2873_v20  ;;  %v789_v34 = vadd.f32 %v767_v50, %v613_v43  ;;  %v769_v22 = vmul.f32 %v2864_v19, %v2701_v59  ;;  %v2889_v20 = vrot.slane %v2796_v51, %v540_v21  ;;  %v3769_v19 = vmov 6  }
 0x12e   : > { %3762 = vst [vmem:[#allocation82_spill] sm:$0xff] %v2870_v8  ;;  %3764 = vst [vmem:[#allocation84_spill] sm:$0xff] %v2876_v48  ;;  %v2878_v60 = vpop.permute.xlu1 %819  ;;  %1363 = vperm.xlu0 %2189, %v2440_v10   ;;  %v840_v45 = vpop.permute.xlu0 %839  ;;  %v2886_v8 = vrot.slane %v2775_v49, %v2814_v18  ;;  %v2892_v17 = vrot.slane %v2799_v46, %v540_v21  ;;  %v2899_v10 = vrot.slane %v2754_v13, %v2784_v47 }
 0x12f   : > { %3765 = vst [vmem:[#allocation85_spill] sm:$0xff] %v2878_v60  ;;  %v943_v36 = vmul.f32 %v2843_v37, %v840_v45  ;;  %v2895_v60 = vrot.slane %v2802_v23, %v540_v21  ;;  %v615_v43 = vadd.f32 %v593_v41, %v439_v53  ;;  %v595_v45 = vmul.f32 %v2860_v15, %v2638_v62 }
 0x130   : > { %3766 = vst [vmem:[#allocation86_spill] sm:$0xff] %v2886_v8  ;;  %v2905_v59 = vrot.slane %v2778_v7, %v2784_v47  ;;  %v441_v21 = vmul.f32 %v2824_v58, %v2568_v38  ;;  %v2914_v49 = vrot.slane %v2751_v9, %v2784_v47  ;;  %v2918_v41 = vrot.slane %v2757_v27, %v2784_v47 }
 0x131   : > { %v2907_v50 = vadd.f32 %v943_v36, %v789_v34  ;;  %2188 = vset.pattern.permute.xlu1 %v3769_v19  ;;  %v791_v53 = vadd.f32 %v769_v22, %v615_v43  ;;  %v2929_v36 = vrot.slane %v2778_v7, %v2814_v18  ;;  %v2937_v15 = vrot.slane %v2781_v55, %v2784_v47 }
 0x132   : > { %3767 = vst [vmem:[#allocation87_spill] sm:$0xff] %v2905_v59  ;;  %1331 = vperm.xlu1 %2188, %v2408_v2   ;;  %v2921_v62 = vpop.permute.xlu1 %827  ;;  %1371 = vperm.xlu0 %2189, %v2448_v12   ;;  %v848_v34 = vpop.permute.xlu0 %847  ;;  %v771_v19 = vmul.f32 %v2905_v59, %v2707_v57  ;;  %v2941_v12 = vrot.slane %v2796_v51, %v2784_v47 }
 0x133   : > { %3768 = vst [vmem:[#allocation88_spill] sm:$0xff] %v2907_v50  ;;  %v945_v38 = vmul.f32 %v2886_v8, %v848_v34  ;;  %3770 = vst [vmem:[#allocation89_spill] sm:$0xff] %v2929_v36  ;;  %v2933_v50 = vrot.slane %v2764_v54, %v2784_v47  ;;  %v2945_v22 = vrot.slane %v2799_v46, %v2784_v47 }
 0x134   : > { %3771 = vst [vmem:[#allocation90_spill] sm:$0xff] %v2937_v15  ;;  %v617_v57 = vadd.f32 %v595_v45, %v441_v21  ;;  %v597_v43 = vmul.f32 %v2876_v48, %v2644_v0  ;;  %v2951_v34 = vrot.slane %v2802_v23, %v2784_v47  ;;  %v2957_v7 = vmul.f32 %v2787_v63, %v2534_v25  ;;  %v3800_v48 = vld [vmem:[#allocation4_spill] sm:$0xff] }
 0x135   : > { %v2953_v59 = vadd.f32 %v945_v38, %v791_v53  ;;  %v2961_v8 = vmul.f32 %v2790_v52, %v2536_v26  ;;  %v443_v45 = vmul.f32 %v2827_v4, %v2574_v40  ;;  %v773_v53 = vmul.f32 %v2937_v15, %v2713_v61 }
 0x136   : > { %1339 = vperm.xlu1 %2188, %v2405_v1   ;;  %v2966_v0 = vpop.permute.xlu1 %835  ;;  %1379 = vperm.xlu0 %2189, %v2456_v14   ;;  %v856_v47 = vpop.permute.xlu0 %855  ;;  %v793_v21 = vadd.f32 %v771_v19, %v617_v57  ;;  %v2974_v26 = vrot.slane %v2781_v55, %v2814_v18  ;;  %v2978_v40 = vmul.f32 %v2787_v63, %v2539_v28  ;;  %v3792_v55 = vld [vmem:[#allocation36_spill] sm:$0xff] }
 0x137   : > { %3772 = vst [vmem:[#allocation91_spill] sm:$0xff] %v2953_v59  ;;  %v947_v25 = vmul.f32 %v2929_v36, %v856_v47  ;;  %v429_v1 = vmul.f32 %v2790_v52, %v2542_v29  ;;  %v2984_v14 = vrot.slane %v2754_v13, %v2814_v18  ;;  %v2988_v61 = vrot.slane %v2751_v9, %v2814_v18  ;;  %v3784_v59 = vld [vmem:[#allocation20_spill] sm:$0xff] }
 0x138   : > { %3773 = vst [vmem:[#allocation92_spill] sm:$0xff] %v2974_v26  ;;  %v2992_v19 = vmul.f32 %v2793_v6, %v2545_v30  ;;  %v619_v38 = vadd.f32 %v597_v43, %v443_v45  ;;  %v599_v28 = vmul.f32 %v2889_v20, %v2650_v24  ;;  %v3000_v29 = vmul.f32 %v2793_v6, %v2548_v31 }
 0x139   : > { %v2996_v63 = vadd.f32 %v947_v25, %v793_v21  ;;  %v445_v52 = vmul.f32 %v2837_v39, %v2580_v42  ;;  %v3006_v57 = vrot.slane %v2757_v27, %v2814_v18  ;;  %v775_v45 = vmul.f32 %v2941_v12, %v2719_v56  ;;  %v3777_v21 = vld [vmem:[#allocation15_spill] sm:$0xff] }
 0x13a   : > { %1343 = vperm.xlu1 %2188, %v2413_v3   ;;  %v3009_v30 = vpop.permute.xlu1 %843  ;;  %1387 = vperm.xlu0 %2189, %v2464_v16   ;;  %v864_v24 = vpop.permute.xlu0 %863  ;;  %v795_v43 = vadd.f32 %v773_v53, %v619_v38  ;;  %v925_v42 = vrot.slane %v2796_v51, %v2814_v18  ;;  %v3019_v6 = vmul.f32 %v2818_v5, %v2550_v32  ;;  %v3778_v53 = vld [vmem:[#allocation16_spill] sm:$0xff] }
 0x13b   : > { %3774 = vst [vmem:[#allocation93_spill] sm:$0xff] %v2996_v63  ;;  %3775 = vst [vmem:[#allocation94_spill] sm:$0xff] %v3009_v30  ;;  %v949_v31 = vmul.f32 %v2974_v26, %v864_v24  ;;  %v3023_v47 = vmul.f32 %v2818_v5, %v2554_v33  ;;  %v3027_v16 = vmul.f32 %v2772_v11, %v3777_v21  ;;  %v3779_v24 = vld [vmem:[#allocation38_spill] sm:$0xff]  ;;  %v3781_v5 = vld [vmem:[#allocation17_spill] sm:$0xff] }
 0x13c   : > { %3776 = vst [vmem:[#allocation95_spill] sm:$0xff] %v3019_v6  ;;  %v3031_v56 = vrot.slane %v2764_v54, %v2814_v18  ;;  %v3035_v25 = vmul.f32 %v2821_v44, %v3778_v53  ;;  %v621_v38 = vadd.f32 %v599_v28, %v445_v52  ;;  %v601_v32 = vmul.f32 %v2892_v17, %v3779_v24  ;;  %v3783_v11 = vld [vmem:[#allocation19_spill] sm:$0xff]  ;;  %v3787_v28 = vld [vmem:[#allocation10_spill] sm:$0xff] }
 0x13d   : > { %v3039_v63 = vadd.f32 %v949_v31, %v795_v43  ;;  %v3043_v33 = vmul.f32 %v2824_v58, %v3781_v5  ;;  %v444_v21 = vmul.f32 %v2837_v39, %v3783_v11  ;;  %v447_v51 = vmul.f32 %v2846_v35, %v3784_v59  ;;  %v3785_v26 = vld [vmem:[#allocation3_spill] sm:$0xff]  ;;  %v3788_v43 = vld [vmem:[#allocation56_spill] sm:$0xff]  ;;  %v3789_v5 = vld [vmem:[#allocation21_spill] sm:$0xff] }
 0x13e   : > { %1351 = vperm.xlu1 %2188, %v3785_v26   ;;  %v3050_v44 = vpop.permute.xlu1 %851  ;;  %1395 = vperm.xlu0 %2189, %v3787_v28   ;;  %v872_v52 = vpop.permute.xlu0 %871  ;;  %v797_v53 = vadd.f32 %v775_v45, %v621_v38  ;;  %v777_v31 = vmul.f32 %v2945_v22, %v3788_v43  ;;  %v929_v58 = vrot.slane %v2799_v46, %v2814_v18  ;;  %v3790_v11 = vld [vmem:[#allocation24_spill] sm:$0xff]  ;;  %v3791_v59 = vld [vmem:[#allocation78_spill] sm:$0xff]  ;;  %v3795_v38 = vld [vmem:[#allocation77_spill] sm:$0xff] }
 0x13f   : > { %3780 = vst [vmem:[#allocation15_spill] sm:$0xff] %v3039_v63  ;;  %3782 = vst [vmem:[#allocation16_spill] sm:$0xff] %v3043_v33  ;;  %v951_v24 = vmul.f32 %v925_v42, %v872_v52  ;;  %v446_v39 = vmul.f32 %v2846_v35, %v3789_v5  ;;  %v583_v63 = vmul.f32 %v3791_v59, %v3790_v11  ;;  %v3793_v6 = vld [vmem:[#allocation58_spill] sm:$0xff]  ;;  %v3796_v52 = vld [vmem:[#allocation40_spill] sm:$0xff] }
 0x140   : > { %3786 = vst [vmem:[#allocation38_spill] sm:$0xff] %v3050_v44  ;;  %v598_v15 = vmul.f32 %v2889_v20, %v3792_v55  ;;  %v3064_v28 = vsub.s32 4, %v3793_v6  ;;  %v3794_v45 = vld [vmem:[#allocation22_spill] sm:$0xff]  ;;  %v623_v43 = vadd.f32 %v601_v32, %v447_v51  ;;  %v603_v36 = vmul.f32 %v2895_v60, %v3796_v52  ;;  %v3798_v44 = vld [vmem:[#allocation23_spill] sm:$0xff]  ;;  %v3799_v5 = vld [vmem:[#allocation53_spill] sm:$0xff] }
 0x141   : > { %v449_v4 = vmul.f32 %v3795_v38, %v3794_v45  ;;  %v3070_v46 = vadd.f32 %v951_v24, %v797_v53  ;;  %v448_v35 = vmul.f32 %v3795_v38, %v3798_v44  ;;  %v774_v11 = vmul.f32 %v2941_v12, %v3799_v5  ;;  %v3802_v20 = vld [vmem:[#allocation12_spill] sm:$0xff]  ;;  %v3803_v32 = vld [vmem:[#allocation25_spill] sm:$0xff]  ;;  %v3804_v45 = vld [vmem:[#allocation59_spill] sm:$0xff] }
 0x142   : > { %1359 = vperm.xlu1 %2188, %v3800_v48   ;;  %v3077_v55 = vpop.permute.xlu1 %859  ;;  %1403 = vperm.xlu0 %2189, %v3802_v20   ;;  %v880_v6 = vpop.permute.xlu0 %879  ;;  %v933_v51 = vrot.slane %v2802_v23, %v2814_v18  ;;  %v582_v53 = vmul.f32 %v3791_v59, %v3803_v32  ;;  %v799_v24 = vadd.f32 %v777_v31, %v623_v43  ;;  %v3805_v12 = vld [vmem:[#allocation26_spill] sm:$0xff]  ;;  %v3806_v5 = vld [vmem:[#allocation79_spill] sm:$0xff]  ;;  %v3808_v23 = vld [vmem:[#allocation37_spill] sm:$0xff] }
 0x143   : > { %3797 = vst [vmem:[#allocation17_spill] sm:$0xff] %v3070_v46  ;;  %3801 = vst [vmem:[#allocation19_spill] sm:$0xff] %v3077_v55  ;;  %v779_v44 = vmul.f32 %v2951_v34, %v3804_v45  ;;  %v953_v38 = vmul.f32 %v929_v58, %v880_v6  ;;  %v605_v52 = vadd.f32 %v583_v63, %v429_v1  ;;  %v3807_v55 = vld [vmem:[#allocation27_spill] sm:$0xff]  ;;  %v3809_v32 = vld [vmem:[#allocation28_spill] sm:$0xff] }
 0x144   : > { %v584_v46 = vmul.f32 %v3806_v5, %v3805_v12  ;;  %v620_v33 = vadd.f32 %v598_v15, %v444_v21  ;;  %v3090_v20 = vrot.slane %v2754_v13, %v3064_v28  ;;  %v585_v18 = vmul.f32 %v3806_v5, %v3807_v55  ;;  %v3810_v6 = vld [vmem:[#allocation82_spill] sm:$0xff]  ;;  %v3812_v21 = vld [vmem:[#allocation5_spill] sm:$0xff] }
 0x145   : > { %v600_v59 = vmul.f32 %v2892_v17, %v3808_v23  ;;  %v625_v31 = vadd.f32 %v603_v36, %v449_v4  ;;  %v3096_v43 = vadd.f32 %v953_v38, %v799_v24  ;;  %v586_v1 = vmul.f32 %v3810_v6, %v3809_v32  ;;  %v3811_v63 = vld [vmem:[#allocation42_spill] sm:$0xff]  ;;  %v3815_v38 = vld [vmem:[#allocation64_spill] sm:$0xff]  ;;  %v3816_v32 = vld [vmem:[#allocation39_spill] sm:$0xff] }
 0x146   : > { %v759_v45 = vmul.f32 %v2899_v10, %v3811_v63  ;;  %v796_v15 = vadd.f32 %v774_v11, %v620_v33  ;;  %1367 = vperm.xlu1 %2188, %v3812_v21   ;;  %v868_v12 = vpop.permute.xlu1 %867  ;;  %v3813_v13 = vld [vmem:[#allocation14_spill] sm:$0xff]  ;;  %v888_v30 = vpop.permute.xlu0 %887  ;;  %v604_v36 = vadd.f32 %v582_v53, %v2961_v8  ;;  %v3108_v24 = vadd.f32 %v584_v46, %v2957_v7  ;;  %v3817_v46 = vld [vmem:[#allocation44_spill] sm:$0xff] }
 0x147   : > { %1411 = vperm.xlu0 %2189, %v3813_v13   ;;  %v3814_v55 = vld [vmem:[#allocation54_spill] sm:$0xff]  ;;  %v801_v17 = vadd.f32 %v779_v44, %v625_v31  ;;  %v950_v23 = vmul.f32 %v925_v42, %v868_v12  ;;  %v955_v4 = vmul.f32 %v933_v51, %v888_v30  ;;  %v935_v33 = vmul.f32 %v2984_v14, %v3815_v38  ;;  %v3823_v38 = vld [vmem:[#allocation29_spill] sm:$0xff] }
 0x148   : > { %v776_v5 = vmul.f32 %v2945_v22, %v3814_v55  ;;  %v3114_v11 = vrot.slane %v2757_v27, %v3064_v28  ;;  %v622_v13 = vadd.f32 %v600_v59, %v446_v39  ;;  %v602_v63 = vmul.f32 %v2895_v60, %v3816_v32  ;;  %v3818_v53 = vld [vmem:[#allocation6_spill] sm:$0xff]  ;;  %v3819_v59 = vld [vmem:[#allocation55_spill] sm:$0xff] }
 0x149   : > { %v3118_v22 = vadd.f32 %v950_v23, %v796_v15  ;;  %v3120_v42 = vadd.f32 %v955_v4, %v801_v17  ;;  %v3123_v8 = vadd.f32 %v585_v18, %v2978_v40  ;;  %v781_v7 = vadd.f32 %v759_v45, %v605_v52  ;;  %v3820_v52 = vld [vmem:[#allocation30_spill] sm:$0xff]  ;;  %v3821_v18 = vld [vmem:[#allocation83_spill] sm:$0xff]  ;;  %v3822_v17 = vld [vmem:[#allocation85_spill] sm:$0xff] }
 0x14a   : > { %v762_v30 = vmul.f32 %v2918_v41, %v3817_v46  ;;  %1375 = vperm.xlu1 %2188, %v3818_v53   ;;  %v876_v44 = vpop.permute.xlu1 %875  ;;  %v2332_v31 = vmov 7   ;;  %v608_v39 = vadd.f32 %v586_v1, %v3000_v29  ;;  %v798_v60 = vadd.f32 %v776_v5, %v622_v13  ;;  %v3824_v5 = vld [vmem:[#allocation41_spill] sm:$0xff]  ;;  %v3825_v13 = vld [vmem:[#allocation46_spill] sm:$0xff] }
 0x14b   : > { %2190 = vset.pattern.permute.xlu0 %v2332_v31  ;;  %v778_v15 = vmul.f32 %v2951_v34, %v3819_v59  ;;  %v952_v12 = vmul.f32 %v929_v58, %v876_v44  ;;  %v984_v40 = vpop.permute.xlu0 %983  ;;  %v588_v45 = vmul.f32 %v3821_v18, %v3820_v52  ;;  %v957_v55 = vadd.f32 %v935_v33, %v781_v7  ;;  %v3826_v33 = vld [vmem:[#allocation7_spill] sm:$0xff] }
 0x14c   : > { %1507 = vperm.xlu0 %2190, %v2408_v2   ;;  %v938_v23 = vmul.f32 %v3006_v57, %v3822_v17  ;;  %v1111_v4 = vmul.f32 %v3090_v20, %v984_v40  ;;  %v587_v29 = vmul.f32 %v3810_v6, %v3823_v38  ;;  %v624_v1 = vadd.f32 %v602_v63, %v448_v35  ;;  %v3827_v6 = vld [vmem:[#allocation32_spill] sm:$0xff]  ;;  %v3828_v35 = vld [vmem:[#allocation63_spill] sm:$0xff]  ;;  %v3832_v38 = vld [vmem:[#allocation73_spill] sm:$0xff] }
 0x14d   : > { %v758_v34 = vmul.f32 %v2899_v10, %v3824_v5  ;;  %v3142_v58 = vadd.f32 %v952_v12, %v798_v60  ;;  %v784_v2 = vadd.f32 %v762_v30, %v608_v39  ;;  %v764_v32 = vmul.f32 %v2933_v50, %v3825_v13  ;;  %v3829_v10 = vld [vmem:[#allocation57_spill] sm:$0xff]  ;;  %v3830_v17 = vld [vmem:[#allocation43_spill] sm:$0xff] }
 0x14e   : > { %v3146_v46 = vadd.f32 %v1111_v4, %v957_v55  ;;  %1383 = vperm.xlu1 %2188, %v3826_v33   ;;  %v884_v7 = vpop.permute.xlu1 %883  ;;  %v3151_v53 = vrot.slane %v2764_v54, %v3064_v28  ;;  %v590_v63 = vmul.f32 %v3828_v35, %v3827_v6  ;;  %v800_v44 = vadd.f32 %v778_v15, %v624_v1  ;;  %v3835_v5 = vld [vmem:[#allocation33_spill] sm:$0xff]  ;;  %v3837_v33 = vld [vmem:[#allocation75_spill] sm:$0xff] }
 0x14f   : > { %v934_v60 = vmul.f32 %v2984_v14, %v3829_v10  ;;  %v954_v30 = vmul.f32 %v933_v51, %v884_v7  ;;  %v996_v39 = vpop.permute.xlu0 %995  ;;  %v610_v59 = vadd.f32 %v588_v45, %v3023_v47  ;;  %v960_v12 = vadd.f32 %v938_v23, %v784_v2  ;;  %v3833_v45 = vld [vmem:[#allocation8_spill] sm:$0xff] }
 0x150   : > { %1519 = vperm.xlu0 %2190, %v2413_v3   ;;  %v940_v40 = vmul.f32 %v3031_v56, %v2921_v62  ;;  %v1114_v52 = vmul.f32 %v3114_v11, %v996_v39  ;;  %v780_v55 = vadd.f32 %v758_v34, %v604_v36  ;;  %v760_v4 = vmul.f32 %v2914_v49, %v3830_v17  ;;  %v3831_v3 = vld [vmem:[#allocation48_spill] sm:$0xff]  ;;  %v3834_v62 = vld [vmem:[#allocation61_spill] sm:$0xff] }
 0x151   : > { %v3164_v15 = vadd.f32 %v954_v30, %v800_v44  ;;  %v1073_v14 = vrot.slane %v2751_v9, %v3064_v28  ;;  %v786_v51 = vadd.f32 %v764_v32, %v610_v59  ;;  %v766_v1 = vmul.f32 %v3832_v38, %v3831_v3  ;;  %v3836_v34 = vld [vmem:[#allocation72_spill] sm:$0xff]  ;;  %v3839_v59 = vld [vmem:[#allocation66_spill] sm:$0xff] }
 0x152   : > { %v3170_v47 = vadd.f32 %v1114_v52, %v960_v12  ;;  %1391 = vperm.xlu1 %2188, %v3833_v45   ;;  %v3175_v23 = vrot.slane %v3834_v62, %v3064_v28  ;;  %v612_v36 = vadd.f32 %v590_v63, %v3027_v16  ;;  %v592_v2 = vmul.f32 %v3836_v34, %v3835_v5  ;;  %v3841_v52 = vld [vmem:[#allocation81_spill] sm:$0xff]  ;;  %v3846_v45 = vld [vmem:[#allocation94_spill] sm:$0xff] }
 0x153   : > { %v956_v13 = vadd.f32 %v934_v60, %v780_v55  ;;  %v936_v32 = vmul.f32 %v2988_v61, %v3837_v33  ;;  %v980_v7 = vpop.permute.xlu1 %979  ;;  %v1004_v6 = vpop.permute.xlu0 %1003  ;;  %v962_v35 = vadd.f32 %v940_v40, %v786_v51  ;;  %v942_v44 = vmul.f32 %v2843_v37, %v2966_v0  ;;  %v3838_v60 = vld [vmem:[#allocation45_spill] sm:$0xff]  ;;  %v3840_v40 = vld [vmem:[#allocation50_spill] sm:$0xff]  ;;  %v3848_v33 = vld [vmem:[#allocation31_spill] sm:$0xff] }
 0x154   : > { %1527 = vperm.xlu0 %2190, %v3785_v26   ;;  %v1110_v10 = vmul.f32 %v3090_v20, %v980_v7  ;;  %v1116_v30 = vmul.f32 %v3151_v53, %v1004_v6  ;;  %v609_v16 = vadd.f32 %v587_v29, %v2992_v19  ;;  %v782_v63 = vadd.f32 %v760_v4, %v3108_v24  ;;  %v3842_v20 = vld [vmem:[#allocation9_spill] sm:$0xff]  ;;  %v3843_v24 = vld [vmem:[#allocation34_spill] sm:$0xff]  ;;  %v3844_v29 = vld [vmem:[#allocation80_spill] sm:$0xff] }
 0x155   : > { %v761_v39 = vmul.f32 %v2914_v49, %v3838_v60  ;;  %v3193_v12 = vrot.slane %v3839_v59, %v3064_v28  ;;  %v788_v26 = vadd.f32 %v766_v1, %v612_v36  ;;  %v768_v55 = vmul.f32 %v3841_v52, %v3840_v40  ;;  %v3845_v49 = vld [vmem:[#allocation60_spill] sm:$0xff]  ;;  %v3847_v36 = vld [vmem:[#allocation86_spill] sm:$0xff]  ;;  %v3849_v7 = vld [vmem:[#allocation47_spill] sm:$0xff] }
 0x156   : > { %v3197_v37 = vadd.f32 %v1110_v10, %v956_v13  ;;  %v3199_v0 = vadd.f32 %v1116_v30, %v962_v35  ;;  %1399 = vperm.xlu1 %2188, %v3842_v20   ;;  %v614_v19 = vadd.f32 %v592_v2, %v3035_v25  ;;  %v594_v17 = vmul.f32 %v3844_v29, %v3843_v24  ;;  %v3851_v35 = vld [vmem:[#allocation51_spill] sm:$0xff]  ;;  %v3857_v52 = vld [vmem:[#allocation65_spill] sm:$0xff]  ;;  %v3858_v29 = vld [vmem:[#allocation38_spill] sm:$0xff] }
 0x157   : > { %v937_v4 = vmul.f32 %v2988_v61, %v3845_v49  ;;  %v958_v51 = vadd.f32 %v936_v32, %v782_v63  ;;  %v988_v3 = vpop.permute.xlu1 %987  ;;  %v1012_v38 = vpop.permute.xlu0 %1011  ;;  %v964_v1 = vadd.f32 %v942_v44, %v788_v26  ;;  %v944_v5 = vmul.f32 %v3847_v36, %v3846_v45  ;;  %v3850_v32 = vld [vmem:[#allocation67_spill] sm:$0xff]  ;;  %v3859_v49 = vld [vmem:[#allocation89_spill] sm:$0xff] }
 0x158   : > { %1535 = vperm.xlu0 %2190, %v3800_v48   ;;  %v1112_v34 = vmul.f32 %v1073_v14, %v988_v3  ;;  %v1118_v13 = vmul.f32 %v3175_v23, %v1012_v38  ;;  %v589_v25 = vmul.f32 %v3821_v18, %v3848_v33  ;;  %v783_v2 = vadd.f32 %v761_v39, %v3123_v8  ;;  %v3852_v44 = vld [vmem:[#allocation87_spill] sm:$0xff]  ;;  %v3854_v18 = vld [vmem:[#allocation16_spill] sm:$0xff] }
 0x159   : > { %v763_v61 = vmul.f32 %v2918_v41, %v3849_v7  ;;  %v3218_v6 = vrot.slane %v3850_v32, %v3064_v28  ;;  %v790_v48 = vadd.f32 %v768_v55, %v614_v19  ;;  %v770_v10 = vmul.f32 %v3852_v44, %v3851_v35  ;;  %v3853_v60 = vld [vmem:[#allocation11_spill] sm:$0xff]  ;;  %v3856_v39 = vld [vmem:[#allocation84_spill] sm:$0xff] }
 0x15a   : > { %v3222_v30 = vadd.f32 %v1112_v34, %v958_v51  ;;  %v3224_v63 = vadd.f32 %v1118_v13, %v964_v1  ;;  %1407 = vperm.xlu1 %2188, %v3853_v60   ;;  %v616_v26 = vadd.f32 %v594_v17, %v3854_v18  ;;  %v3855_v8 = vld [vmem:[#allocation35_spill] sm:$0xff]  ;;  %v959_v41 = vadd.f32 %v937_v4, %v783_v2  ;;  %v3860_v17 = vld [vmem:[#allocation18_spill] sm:$0xff]  ;;  %v3863_v13 = vld [vmem:[#allocation49_spill] sm:$0xff] }
 0x15b   : > { %v596_v40 = vmul.f32 %v3856_v39, %v3855_v8  ;;  %v939_v20 = vmul.f32 %v3006_v57, %v3857_v52  ;;  %v992_v24 = vpop.permute.xlu1 %991  ;;  %v1020_v55 = vpop.permute.xlu0 %1019  ;;  %v966_v19 = vadd.f32 %v944_v5, %v790_v48  ;;  %v946_v51 = vmul.f32 %v3859_v49, %v3858_v29  ;;  %v3861_v1 = vld [vmem:[#allocation74_spill] sm:$0xff]  ;;  %v3862_v36 = vld [vmem:[#allocation95_spill] sm:$0xff]  ;;  %v3867_v60 = vld [vmem:[#allocation76_spill] sm:$0xff] }
 0x15c   : > { %1543 = vperm.xlu0 %2190, %v3812_v21   ;;  %v1113_v3 = vmul.f32 %v1073_v14, %v992_v24  ;;  %v1120_v38 = vmul.f32 %v3193_v12, %v1020_v55  ;;  %v442_v45 = vmul.f32 %v3861_v1, %v3860_v17  ;;  %v611_v4 = vadd.f32 %v589_v25, %v3862_v36  ;;  %v3864_v21 = vld [vmem:[#allocation52_spill] sm:$0xff]  ;;  %v3865_v2 = vld [vmem:[#allocation90_spill] sm:$0xff]  ;;  %v3866_v14 = vld [vmem:[#allocation13_spill] sm:$0xff] }
 0x15d   : > { %v785_v34 = vadd.f32 %v763_v61, %v609_v16  ;;  %v765_v57 = vmul.f32 %v2933_v50, %v3863_v13  ;;  %v792_v33 = vadd.f32 %v770_v10, %v616_v26  ;;  %v772_v5 = vmul.f32 %v3865_v2, %v3864_v21  ;;  %v2192_v61 = vld [vmem:[%s2402_s25 + $0x58] sm:$0xff]  ;;  %v3868_v10 = vld [vmem:[#allocation68_spill] sm:$0xff]  ;;  %v3869_v8 = vld [vmem:[#allocation19_spill] sm:$0xff] }
 0x15e   : > { %v3243_v7 = vadd.f32 %v1113_v3, %v959_v41  ;;  %v3245_v48 = vadd.f32 %v1120_v38, %v966_v19  ;;  %1415 = vperm.xlu1 %2188, %v3866_v14   ;;  %v618_v35 = vadd.f32 %v596_v40, %v442_v45  ;;  %v941_v25 = vmul.f32 %v3031_v56, %v3867_v60  ;;  %v3870_v39 = vld [vmem:[#allocation92_spill] sm:$0xff]  ;;  %v2196_v13 = vld [vmem:[%s2402_s25 + $0x78] sm:$0xff] }
 0x15f   : > { %v961_v44 = vadd.f32 %v939_v20, %v785_v34  ;;  %v1000_v16 = vpop.permute.xlu1 %999  ;;  %v1028_v50 = vpop.permute.xlu0 %1027  ;;  %v1097_v18 = vrot.slane %v3868_v10, %v3064_v28  ;;  %v968_v26 = vadd.f32 %v946_v51, %v792_v33  ;;  %v948_v41 = vmul.f32 %v3870_v39, %v3869_v8  ;;  %v2193_v19 = vld [vmem:[%s2402_s25 + $0x8] sm:$0xff]  ;;  %v3872_v2 = vld [vmem:[#allocation70_spill] sm:$0xff] }
 0x160   : > { %1551 = vperm.xlu0 %2190, %v2192_v61   ;;  %v1115_v52 = vmul.f32 %v3114_v11, %v1000_v16  ;;  %v1122_v40 = vmul.f32 %v3218_v6, %v1028_v50  ;;  %v787_v20 = vadd.f32 %v765_v57, %v611_v4  ;;  %v794_v24 = vadd.f32 %v772_v5, %v618_v35  ;;  %v2194_v49 = vld [vmem:[%s2402_s25 + $0x68] sm:$0xff]  ;;  %v3871_v11 = vld [vmem:[#allocation69_spill] sm:$0xff]  ;;  %v3874_v50 = vld [vmem:[#allocation71_spill] sm:$0xff] }
 0x161   : > { %v1101_v3 = vrot.slane %v3871_v11, %v3064_v28  ;;  %v2195_v4 = vld [vmem:[%s2402_s25 + $0x10] sm:$0xff]  ;;  %v1105_v5 = vrot.slane %v3872_v2, %v3064_v28  ;;  %v3875_v8 = vld [vmem:[#allocation58_spill] sm:$0xff] }
 0x162   : > { %v3257_v55 = vadd.f32 %v1115_v52, %v961_v44  ;;  %v3259_v56 = vadd.f32 %v1122_v40, %v968_v26  ;;  %2191 = vset.pattern.permute.xlu1 %v2332_v31  ;;  %v963_v38 = vadd.f32 %v941_v25, %v787_v20  ;;  %v970_v17 = vadd.f32 %v948_v41, %v794_v24  ;;  %v2197_v44 = vld [vmem:[%s2402_s25 + $0x20] sm:$0xff]  ;;  %v2198_v25 = vld [vmem:[%s2402_s25 + $0x88] sm:$0xff]  ;;  %v2199_v40 = vld [vmem:[%s2402_s25 + $0x30] sm:$0xff] }
 0x163   : > { %1511 = vperm.xlu1 %2191, %v2193_v19   ;;  %v1008_v29 = vpop.permute.xlu1 %1007  ;;  %v1036_v51 = vpop.permute.xlu0 %1035  ;;  %v1109_v26 = vrot.slane %v3874_v50, %v3064_v28  ;;  %v3288_v39 = vsub.s32 5, %v3875_v8  ;;  %v3876_v41 = vld [vmem:[#allocation91_spill] sm:$0xff]  ;;  %v2200_v24 = vld [vmem:[%s2402_s25 + $0x98] sm:$0xff] }
 0x164   : > { %1559 = vperm.xlu0 %2190, %v2194_v49   ;;  %v1117_v1 = vmul.f32 %v3151_v53, %v1008_v29  ;;  %v1124_v45 = vmul.f32 %v1097_v18, %v1036_v51  ;;  %v3873_v53 = vld [vmem:[#allocation88_spill] sm:$0xff]  ;;  %v3877_v29 = vld [vmem:[#allocation62_spill] sm:$0xff]  ;;  %v3878_v51 = vld [vmem:[#allocation93_spill] sm:$0xff] }
 0x165   : > { %v1245_v49 = vrot.slane %v3877_v29, %v3288_v39 }
 0x166   : > { %v3267_v36 = vadd.f32 %v1117_v1, %v963_v38  ;;  %v3269_v31 = vadd.f32 %v1124_v45, %v970_v17  ;;  %v2202_v45 = vld [vmem:[%s2402_s25 + $0xa8] sm:$0xff] }
 0x167   : > { %1515 = vperm.xlu1 %2191, %v2195_v4   ;;  %v1016_v34 = vpop.permute.xlu1 %1015  ;;  %v1044_v57 = vpop.permute.xlu0 %1043 }
 0x168   : > { %1567 = vperm.xlu0 %2190, %v2196_v13   ;;  %v1119_v33 = vmul.f32 %v3175_v23, %v1016_v34  ;;  %v1126_v21 = vmul.f32 %v1101_v3, %v1044_v57  ;;  %v1249_v13 = vrot.slane %v2751_v9, %v3288_v39  ;;  %v3879_v57 = vld [vmem:[#allocation15_spill] sm:$0xff] }
 0x16a   : > { %v3277_v14 = vadd.f32 %v1119_v33, %v3873_v53  ;;  %v3280_v35 = vadd.f32 %v1126_v21, %v3118_v22  ;;  %v2203_v53 = vld [vmem:[%s2402_s25 + $0x50] sm:$0xff] }
 0x16b   : > { %1523 = vperm.xlu1 %2191, %v2197_v44   ;;  %v1024_v60 = vpop.permute.xlu1 %1023  ;;  %v1052_v16 = vpop.permute.xlu0 %1051 }
 0x16c   : > { %1575 = vperm.xlu0 %2190, %v2198_v25   ;;  %v1121_v23 = vmul.f32 %v3193_v12, %v1024_v60  ;;  %v1128_v61 = vmul.f32 %v1105_v5, %v1052_v16  ;;  %v3880_v16 = vld [vmem:[#allocation17_spill] sm:$0xff] }
 0x16e   : > { %v3291_v22 = vadd.f32 %v1121_v23, %v3876_v41  ;;  %v3294_v52 = vadd.f32 %v1128_v61, %v3142_v58  ;;  %v2201_v58 = vld [vmem:[%s2402_s25 + $0x40] sm:$0xff] }
 0x16f   : > { %1531 = vperm.xlu1 %2191, %v2199_v40   ;;  %v1032_v20 = vpop.permute.xlu1 %1031  ;;  %v1060_v12 = vpop.permute.xlu0 %1059  ;;  %v2204_v41 = vld [vmem:[%s2402_s25 + $0x60] sm:$0xff] }
 0x170   : > { %1583 = vperm.xlu0 %2190, %v2200_v24   ;;  %v1123_v19 = vmul.f32 %v3218_v6, %v1032_v20  ;;  %v1130_v28 = vmul.f32 %v1109_v26, %v1060_v12 }
 0x172   : > { %v3302_v38 = vadd.f32 %v1123_v19, %v3878_v51  ;;  %v3305_v17 = vadd.f32 %v1130_v28, %v3164_v15  ;;  %v2205_v28 = vld [vmem:[%s2402_s25 + $0x70] sm:$0xff] }
 0x173   : > { %1539 = vperm.xlu1 %2191, %v2201_v58   ;;  %v1040_v1 = vpop.permute.xlu1 %1039 }
 0x174   : > { %1591 = vperm.xlu0 %2190, %v2202_v45   ;;  %v1125_v4 = vmul.f32 %v1097_v18, %v1040_v1  ;;  %v1156_v34 = vpop.permute.xlu0 %1155  ;;  %v1253_v18 = vrot.slane %v2757_v27, %v3288_v39 }
 0x175   : > { %v1286_v6 = vmul.f32 %v1245_v49, %v1156_v34  ;;  %v2206_v34 = vld [vmem:[%s2402_s25 + $0x80] sm:$0xff] }
 0x176   : > { %v1147_v33 = vadd.f32 %v1125_v4, %v3879_v57 }
 0x177   : > { %v3313_v21 = vadd.f32 %v1286_v6, %v3197_v37  ;;  %1547 = vperm.xlu1 %2191, %v2203_v53   ;;  %v1048_v15 = vpop.permute.xlu1 %1047 }
 0x178   : > { %v1127_v44 = vmul.f32 %v1101_v3, %v1048_v15  ;;  %v1168_v60 = vpop.permute.xlu0 %1167  ;;  %v1257_v3 = vrot.slane %v2764_v54, %v3288_v39 }
 0x179   : > { %v1289_v25 = vmul.f32 %v1249_v13, %v1168_v60 }
 0x17a   : > { %v1149_v23 = vadd.f32 %v1127_v44, %v3880_v16  ;;  %v2207_v44 = vld [vmem:[%s2402_s25 + $0x90] sm:$0xff]  ;;  %v1269_v16 = vrot.slane %v3850_v32, %v3288_v39 }
 0x17b   : > { %v3320_v61 = vadd.f32 %v1289_v25, %v3243_v7  ;;  %1555 = vperm.xlu1 %2191, %v2204_v41   ;;  %v1056_v40 = vpop.permute.xlu1 %1055 }
 0x17c   : > { %v1129_v37 = vmul.f32 %v1105_v5, %v1056_v40  ;;  %v1176_v20 = vpop.permute.xlu0 %1175  ;;  %v1261_v5 = vrot.slane %v3834_v62, %v3288_v39  ;;  %v2208_v40 = vld [vmem:[%s2402_s25 + $0xa0] sm:$0xff] }
 0x17d   : > { %v1291_v24 = vmul.f32 %v1253_v18, %v1176_v20 }
 0x17e   : > { %v1151_v12 = vadd.f32 %v1129_v37, %v3096_v43 }
 0x17f   : > { %v3327_v19 = vadd.f32 %v1291_v24, %v3257_v55  ;;  %1563 = vperm.xlu1 %2191, %v2205_v28   ;;  %v1064_v51 = vpop.permute.xlu1 %1063  ;;  %v1273_v24 = vrot.slane %v3868_v10, %v3288_v39 }
 0x180   : > { %v1131_v7 = vmul.f32 %v1109_v26, %v1064_v51  ;;  %v1184_v58 = vpop.permute.xlu0 %1183  ;;  %v1265_v26 = vrot.slane %v3839_v59, %v3288_v39 }
 0x181   : > { %v1293_v1 = vmul.f32 %v1257_v3, %v1184_v58 }
 0x182   : > { %v1153_v45 = vadd.f32 %v1131_v7, %v3120_v42 }
 0x183   : > { %v3334_v4 = vadd.f32 %v1293_v1, %v3267_v36  ;;  %1571 = vperm.xlu1 %2191, %v2206_v34  }
 0x184   : > { %v1160_v43 = vpop.permute.xlu1 %1159  ;;  %v1192_v55 = vpop.permute.xlu0 %1191 }
 0x185   : > { %v1287_v6 = vmul.f32 %v1245_v49, %v1160_v43  ;;  %v1295_v57 = vmul.f32 %v1261_v5, %v1192_v55 }
 0x187   : > { %v1309_v53 = vadd.f32 %v1287_v6, %v3146_v46  ;;  %v3341_v15 = vadd.f32 %v1295_v57, %v3277_v14  ;;  %1579 = vperm.xlu1 %2191, %v2207_v44  }
 0x188   : > { %v1164_v42 = vpop.permute.xlu1 %1163  ;;  %v1200_v36 = vpop.permute.xlu0 %1199 }
 0x189   : > { %v1288_v60 = vmul.f32 %v1249_v13, %v1164_v42  ;;  %v1297_v25 = vmul.f32 %v1265_v26, %v1200_v36 }
 0x18b   : > { %v3347_v49 = vadd.f32 %v1288_v60, %v3222_v30  ;;  %v3350_v41 = vadd.f32 %v1297_v25, %v3291_v22  ;;  %1587 = vperm.xlu1 %2191, %v2208_v40   ;;  %v1277_v22 = vrot.slane %v3871_v11, %v3288_v39 }
 0x18c   : > { %v1172_v46 = vpop.permute.xlu1 %1171  ;;  %v1208_v14 = vpop.permute.xlu0 %1207 }
 0x18d   : > { %v1290_v37 = vmul.f32 %v1253_v18, %v1172_v46  ;;  %v1299_v20 = vmul.f32 %v1269_v16, %v1208_v14 }
 0x18f   : > { %v1312_v13 = vadd.f32 %v1290_v37, %v3170_v47  ;;  %v3357_v28 = vadd.f32 %v1299_v20, %v3302_v38  ;;  %v1281_v47 = vrot.slane %v3872_v2, %v3288_v39 }
 0x190   : > { %v1180_v51 = vpop.permute.xlu1 %1179  ;;  %v1216_v30 = vpop.permute.xlu0 %1215 }
 0x191   : > { %v1292_v7 = vmul.f32 %v1257_v3, %v1180_v51  ;;  %v1301_v58 = vmul.f32 %v1273_v24, %v1216_v30 }
 0x193   : > { %v1314_v1 = vadd.f32 %v1292_v7, %v3199_v0  ;;  %v3362_v34 = vadd.f32 %v1301_v58, %v1147_v33  ;;  %v1285_v0 = vrot.slane %v3874_v50, %v3288_v39  ;;  %v3372_v33 = vsub.s32 6, %v3875_v8 }
 0x194   : > { %v1188_v18 = vpop.permute.xlu1 %1187  ;;  %v1224_v43 = vpop.permute.xlu0 %1223 }
 0x195   : > { %v1294_v55 = vmul.f32 %v1261_v5, %v1188_v18  ;;  %v1303_v6 = vmul.f32 %v1277_v22, %v1224_v43 }
 0x197   : > { %v1316_v38 = vadd.f32 %v1294_v55, %v3224_v63  ;;  %v3367_v57 = vadd.f32 %v1303_v6, %v1149_v23  ;;  %v1421_v23 = vrot.slane %v3877_v29, %v3372_v33 }
 0x198   : > { %v1196_v3 = vpop.permute.xlu1 %1195  ;;  %v1232_v44 = vpop.permute.xlu0 %1231 }
 0x199   : > { %v1296_v42 = vmul.f32 %v1265_v26, %v1196_v3  ;;  %v1305_v36 = vmul.f32 %v1281_v47, %v1232_v44 }
 0x19b   : > { %v1318_v5 = vadd.f32 %v1296_v42, %v3245_v48  ;;  %v3375_v60 = vadd.f32 %v1305_v36, %v1151_v12  ;;  %v1429_v48 = vrot.slane %v2757_v27, %v3372_v33 }
 0x19c   : > { %v1204_v25 = vpop.permute.xlu1 %1203  ;;  %v1240_v40 = vpop.permute.xlu0 %1239 }
 0x19d   : > { %v1298_v46 = vmul.f32 %v1269_v16, %v1204_v25  ;;  %v1307_v63 = vmul.f32 %v1285_v0, %v1240_v40 }
 0x19f   : > { %v1320_v26 = vadd.f32 %v1298_v46, %v3259_v56  ;;  %v3380_v14 = vadd.f32 %v1307_v63, %v1153_v45  ;;  %v1433_v56 = vrot.slane %v2764_v54, %v3372_v33  ;;  %v1441_v54 = vrot.slane %v3839_v59, %v3372_v33 }
 0x1a0   : > { %v1212_v37 = vpop.permute.xlu1 %1211 }
 0x1a1   : > { %v1300_v39 = vmul.f32 %v1273_v24, %v1212_v37  ;;  %v1336_v20 = vpop.permute.xlu0 %1335 }
 0x1a2   : > { %v1463_v51 = vmul.f32 %v1421_v23, %v1336_v20 }
 0x1a3   : > { %v1322_v12 = vadd.f32 %v1300_v39, %v3269_v31  ;;  %v1437_v31 = vrot.slane %v3834_v62, %v3372_v33  ;;  %v1425_v62 = vrot.slane %v2751_v9, %v3372_v33 }
 0x1a4   : > { %v3385_v30 = vadd.f32 %v1463_v51, %v1309_v53  ;;  %v1220_v16 = vpop.permute.xlu1 %1219 }
 0x1a5   : > { %v1302_v7 = vmul.f32 %v1277_v22, %v1220_v16  ;;  %v1348_v58 = vpop.permute.xlu0 %1347 }
 0x1a6   : > { %v1466_v18 = vmul.f32 %v1429_v48, %v1348_v58 }
 0x1a7   : > { %v1324_v45 = vadd.f32 %v1302_v7, %v3280_v35 }
 0x1a8   : > { %v3390_v43 = vadd.f32 %v1466_v18, %v1312_v13  ;;  %v1228_v24 = vpop.permute.xlu1 %1227 }
 0x1a9   : > { %v1304_v55 = vmul.f32 %v1281_v47, %v1228_v24  ;;  %v1356_v6 = vpop.permute.xlu0 %1355 }
 0x1aa   : > { %v1468_v3 = vmul.f32 %v1433_v56, %v1356_v6 }
 0x1ab   : > { %v1326_v53 = vadd.f32 %v1304_v55, %v3294_v52  ;;  %v1445_v52 = vrot.slane %v3850_v32, %v3372_v33 }
 0x1ac   : > { %v3395_v44 = vadd.f32 %v1468_v3, %v1314_v1  ;;  %v1236_v22 = vpop.permute.xlu1 %1235 }
 0x1ad   : > { %v1306_v42 = vmul.f32 %v1285_v0, %v1236_v22  ;;  %v1364_v36 = vpop.permute.xlu0 %1363 }
 0x1ae   : > { %v1470_v25 = vmul.f32 %v1437_v31, %v1364_v36 }
 0x1af   : > { %v1328_v35 = vadd.f32 %v1306_v42, %v3305_v17 }
 0x1b0   : > { %v3400_v13 = vadd.f32 %v1470_v25, %v1316_v38  ;;  %v1449_v38 = vrot.slane %v3868_v10, %v3372_v33 }
 0x1b1   : > { %v1332_v47 = vpop.permute.xlu1 %1331  ;;  %v1372_v40 = vpop.permute.xlu0 %1371 }
 0x1b2   : > { %v1462_v46 = vmul.f32 %v1421_v23, %v1332_v47  ;;  %v1472_v63 = vmul.f32 %v1441_v54, %v1372_v40 }
 0x1b4   : > { %v1484_v1 = vadd.f32 %v1462_v46, %v3313_v21  ;;  %v3407_v0 = vadd.f32 %v1472_v63, %v1318_v5  ;;  %v1453_v21 = vrot.slane %v3871_v11, %v3372_v33 }
 0x1b5   : > { %v1340_v37 = vpop.permute.xlu1 %1339  ;;  %v1380_v59 = vpop.permute.xlu0 %1379 }
 0x1b6   : > { %v1464_v39 = vmul.f32 %v1425_v62, %v1340_v37  ;;  %v1474_v17 = vmul.f32 %v1445_v52, %v1380_v59  ;;  %v2209_v59 = vld [vmem:[%s2740_s29 + $0x18] sm:$0xff] }
 0x1b8   : > { %v3412_v23 = vadd.f32 %v1464_v39, %v3347_v49  ;;  %v3414_v20 = vadd.f32 %v1474_v17, %v1320_v26  ;;  %v1457_v49 = vrot.slane %v3872_v2, %v3372_v33 }
 0x1b9   : > { %v1344_v51 = vpop.permute.xlu1 %1343  ;;  %v1388_v16 = vpop.permute.xlu0 %1387 }
 0x1ba   : > { %v1465_v7 = vmul.f32 %v1425_v62, %v1344_v51  ;;  %v1476_v32 = vmul.f32 %v1449_v38, %v1388_v16 }
 0x1bc   : > { %v1487_v5 = vadd.f32 %v1465_v7, %v3320_v61  ;;  %v3419_v58 = vadd.f32 %v1476_v32, %v1322_v12  ;;  %v1461_v61 = vrot.slane %v3874_v50, %v3372_v33  ;;  %v3429_v12 = vsub.s32 7, %v3875_v8  ;;  %v2210_v32 = vld [vmem:[%s2740_s29 + $0x20] sm:$0xff] }
 0x1bd   : > { %v1352_v18 = vpop.permute.xlu1 %1351  ;;  %v1396_v24 = vpop.permute.xlu0 %1395 }
 0x1be   : > { %v1467_v10 = vmul.f32 %v1429_v48, %v1352_v18  ;;  %v1478_v55 = vmul.f32 %v1453_v21, %v1396_v24  ;;  %v1597_v47 = vrot.slane %v3877_v29, %v3429_v12  ;;  %v3452_v39 = vrot.slane %v2209_v59, %v3429_v12 }
 0x1c0   : > { %v1489_v26 = vadd.f32 %v1467_v10, %v3327_v19  ;;  %v3424_v6 = vadd.f32 %v1478_v55, %v1324_v45 }
 0x1c1   : > { %v1360_v3 = vpop.permute.xlu1 %1359  ;;  %v1404_v22 = vpop.permute.xlu0 %1403 }
 0x1c2   : > { %v1469_v42 = vmul.f32 %v1433_v56, %v1360_v3  ;;  %v1480_v11 = vmul.f32 %v1457_v49, %v1404_v22 }
 0x1c4   : > { %v1491_v48 = vadd.f32 %v1469_v42, %v3334_v4  ;;  %v3432_v36 = vadd.f32 %v1480_v11, %v1326_v53  ;;  %v1601_v4 = vrot.slane %v2751_v9, %v3429_v12 }
 0x1c5   : > { %v1368_v25 = vpop.permute.xlu1 %1367 }
 0x1c6   : > { %v1412_v2 = vpop.permute.xlu0 %1411  ;;  %v1471_v19 = vmul.f32 %v1437_v31, %v1368_v25 }
 0x1c7   : > { %v1482_v45 = vmul.f32 %v1461_v61, %v1412_v2 }
 0x1c8   : > { %v1493_v56 = vadd.f32 %v1471_v19, %v3341_v15  ;;  %v1605_v15 = vrot.slane %v2757_v27, %v3429_v12 }
 0x1c9   : > { %v3438_v40 = vadd.f32 %v1482_v45, %v1328_v35  ;;  %v1376_v50 = vpop.permute.xlu1 %1375 }
 0x1ca   : > { %v1473_v8 = vmul.f32 %v1441_v54, %v1376_v50 }
 0x1cb   : > { %v1508_v33 = vpop.permute.xlu0 %1507 }
 0x1cc   : > { %v1638_v46 = vmul.f32 %v1597_v47, %v1508_v33  ;;  %v1495_v53 = vadd.f32 %v1473_v8, %v3350_v41 }
 0x1cd   : > { %v1384_v63 = vpop.permute.xlu1 %1383 }
 0x1ce   : > { %v1660_v31 = vadd.f32 %v1638_v46, %v1484_v1  ;;  %v1475_v62 = vmul.f32 %v1445_v52, %v1384_v63 }
 0x1cf   : > { %v1520_v37 = vpop.permute.xlu0 %1519 }
 0x1d0   : > { %1682 = vst [vmem:[%s3443_s4] sm:$0xff] %v1660_v31  ;;  %v1641_v29 = vmul.f32 %v1601_v4, %v1520_v37  ;;  %v1497_v54 = vadd.f32 %v1475_v62, %v3357_v28  ;;  %v2214_v62 = vld [vmem:[%s2740_s29 + $0x40] sm:$0xff] }
 0x1d1   : > { %v1392_v41 = vpop.permute.xlu1 %1391 }
 0x1d2   : > { %v1663_v9 = vadd.f32 %v1641_v29, %v1487_v5  ;;  %v1477_v35 = vmul.f32 %v1449_v38, %v1392_v41  ;;  %v3459_v38 = vrot.slane %v2210_v32, %v3429_v12 }
 0x1d3   : > { %v1528_v1 = vpop.permute.xlu0 %1527 }
 0x1d4   : > { %1685 = vst [vmem:[%s3443_s4 + $0x18] sm:$0xff] %v1663_v9  ;;  %v1643_v52 = vmul.f32 %v1605_v15, %v1528_v1  ;;  %v1499_v17 = vadd.f32 %v1477_v35, %v3362_v34  ;;  %v2215_v35 = vld [vmem:[%s2740_s29 + $0x48] sm:$0xff] }
 0x1d5   : > { %v1400_v16 = vpop.permute.xlu1 %1399 }
 0x1d6   : > { %v1665_v51 = vadd.f32 %v1643_v52, %v1489_v26  ;;  %v1479_v27 = vmul.f32 %v1453_v21, %v1400_v16  ;;  %v2211_v21 = vld [vmem:[%s2740_s29 + $0x28] sm:$0xff]  ;;  %v2216_v16 = vld [vmem:[%s2740_s29 + $0x50] sm:$0xff] }
 0x1d7   : > { %v1536_v7 = vpop.permute.xlu0 %1535  ;;  %v1617_v26 = vrot.slane %v2211_v21, %v3429_v12 }
 0x1d8   : > { %1687 = vst [vmem:[%s3443_s4 + $0x28] sm:$0xff] %v1665_v51  ;;  %v1645_v28 = vmul.f32 %v3452_v39, %v1536_v7  ;;  %v1501_v5 = vadd.f32 %v1479_v27, %v3367_v57 }
 0x1d9   : > { %v1408_v24 = vpop.permute.xlu1 %1407 }
 0x1da   : > { %v1667_v18 = vadd.f32 %v1645_v28, %v1491_v48  ;;  %v1481_v10 = vmul.f32 %v1457_v49, %v1408_v24  ;;  %v2212_v48 = vld [vmem:[%s2740_s29 + $0x30] sm:$0xff] }
 0x1db   : > { %v1544_v34 = vpop.permute.xlu0 %1543  ;;  %v1621_v49 = vrot.slane %v2212_v48, %v3429_v12 }
 0x1dc   : > { %1689 = vst [vmem:[%s3443_s4 + $0x38] sm:$0xff] %v1667_v18  ;;  %v1647_v55 = vmul.f32 %v3459_v38, %v1544_v34  ;;  %v1503_v3 = vadd.f32 %v1481_v10, %v3375_v60 }
 0x1dd   : > { %v1416_v42 = vpop.permute.xlu1 %1415 }
 0x1de   : > { %v1669_v22 = vadd.f32 %v1647_v55, %v1493_v56  ;;  %v1483_v11 = vmul.f32 %v1461_v61, %v1416_v42  ;;  %v2213_v56 = vld [vmem:[%s2740_s29 + $0x38] sm:$0xff] }
 0x1df   : > { %v1552_v25 = vpop.permute.xlu0 %1551  ;;  %v1625_v61 = vrot.slane %v2213_v56, %v3429_v12 }
 0x1e0   : > { %1691 = vst [vmem:[%s3443_s4 + $0x48] sm:$0xff] %v1669_v22  ;;  %v1649_v57 = vmul.f32 %v1617_v26, %v1552_v25  ;;  %v1505_v2 = vadd.f32 %v1483_v11, %v3380_v14 }
 0x1e2   : > { %v1671_v19 = vadd.f32 %v1649_v57, %v1495_v53  ;;  %v1512_v45 = vpop.permute.xlu1 %1511 }
 0x1e3   : > { %v1560_v50 = vpop.permute.xlu0 %1559  ;;  %v1639_v60 = vmul.f32 %v1597_v47, %v1512_v45  ;;  %v1629_v47 = vrot.slane %v2214_v62, %v3429_v12 }
 0x1e4   : > { %1693 = vst [vmem:[%s3443_s4 + $0x58] sm:$0xff] %v1671_v19  ;;  %v1651_v8 = vmul.f32 %v1621_v49, %v1560_v50 }
 0x1e5   : > { %v1661_v33 = vadd.f32 %v1639_v60, %v3385_v30 }
 0x1e6   : > { %v1673_v46 = vadd.f32 %v1651_v8, %v1497_v54  ;;  %v1516_v31 = vpop.permute.xlu1 %1515 }
 0x1e7   : > { %v1568_v63 = vpop.permute.xlu0 %1567  ;;  %1683 = vst [vmem:[%s3443_s4 + $0x8] sm:$0xff] %v1661_v33  ;;  %v1640_v14 = vmul.f32 %v1601_v4, %v1516_v31  ;;  %v1633_v4 = vrot.slane %v2215_v35, %v3429_v12 }
 0x1e8   : > { %1695 = vst [vmem:[%s3443_s4 + $0x68] sm:$0xff] %v1673_v46  ;;  %v1653_v53 = vmul.f32 %v1625_v61, %v1568_v63 }
 0x1e9   : > { %v1662_v37 = vadd.f32 %v1640_v14, %v3412_v23 }
 0x1ea   : > { %v1675_v29 = vadd.f32 %v1653_v53, %v1499_v17  ;;  %v1524_v9 = vpop.permute.xlu1 %1523 }
 0x1eb   : > { %v1576_v41 = vpop.permute.xlu0 %1575  ;;  %1684 = vst [vmem:[%s3443_s4 + $0x10] sm:$0xff] %v1662_v37  ;;  %v1642_v30 = vmul.f32 %v1605_v15, %v1524_v9  ;;  %v1637_v15 = vrot.slane %v2216_v16, %v3429_v12 }
 0x1ec   : > { %1697 = vst [vmem:[%s3443_s4 + $0x78] sm:$0xff] %v1675_v29  ;;  %v1655_v54 = vmul.f32 %v1629_v47, %v1576_v41 }
 0x1ed   : > { %v1664_v1 = vadd.f32 %v1642_v30, %v3390_v43 }
 0x1ee   : > { %v1677_v52 = vadd.f32 %v1655_v54, %v1501_v5  ;;  %v1532_v59 = vpop.permute.xlu1 %1531 }
 0x1ef   : > { %v1584_v51 = vpop.permute.xlu0 %1583  ;;  %1686 = vst [vmem:[%s3443_s4 + $0x20] sm:$0xff] %v1664_v1  ;;  %v1644_v23 = vmul.f32 %v3452_v39, %v1532_v59 }
 0x1f0   : > { %1699 = vst [vmem:[%s3443_s4 + $0x88] sm:$0xff] %v1677_v52  ;;  %v1657_v17 = vmul.f32 %v1633_v4, %v1584_v51 }
 0x1f1   : > { %v1666_v27 = vadd.f32 %v1644_v23, %v3395_v44 }
 0x1f2   : > { %v1679_v7 = vadd.f32 %v1657_v17, %v1503_v3  ;;  %v1540_v28 = vpop.permute.xlu1 %1539 }
 0x1f3   : > { %v1592_v32 = vpop.permute.xlu0 %1591  ;;  %1688 = vst [vmem:[%s3443_s4 + $0x30] sm:$0xff] %v1666_v27  ;;  %v1646_v43 = vmul.f32 %v3459_v38, %v1540_v28 }
 0x1f4   : > { %1701 = vst [vmem:[%s3443_s4 + $0x98] sm:$0xff] %v1679_v7  ;;  %v1659_v5 = vmul.f32 %v1637_v15, %v1592_v32 }
 0x1f5   : > { %v1668_v18 = vadd.f32 %v1646_v43, %v3400_v13 }
 0x1f6   : > { %v1681_v39 = vadd.f32 %v1659_v5, %v1505_v2  ;;  %v1548_v24 = vpop.permute.xlu1 %1547 }
 0x1f7   : > { %1690 = vst [vmem:[%s3443_s4 + $0x40] sm:$0xff] %v1668_v18  ;;  %v1648_v12 = vmul.f32 %v1617_v26, %v1548_v24 }
 0x1f8   : > { %1703 = vst [vmem:[%s3443_s4 + $0xa8] sm:$0xff] %v1681_v39 }
 0x1f9   : > { %v1670_v44 = vadd.f32 %v1648_v12, %v3407_v0 }
 0x1fa   : > { %v1556_v10 = vpop.permute.xlu1 %1555 }
 0x1fb   : > { %1692 = vst [vmem:[%s3443_s4 + $0x50] sm:$0xff] %v1670_v44  ;;  %v1650_v34 = vmul.f32 %v1621_v49, %v1556_v10 }
 0x1fd   : > { %v1672_v55 = vadd.f32 %v1650_v34, %v3414_v20 }
 0x1fe   : > { %v1564_v21 = vpop.permute.xlu1 %1563 }
 0x1ff   : > { %1694 = vst [vmem:[%s3443_s4 + $0x60] sm:$0xff] %v1672_v55  ;;  %v1652_v38 = vmul.f32 %v1625_v61, %v1564_v21 }
 0x201   : > { %v1674_v13 = vadd.f32 %v1652_v38, %v3419_v58 }
 0x202   : > { %v1572_v3 = vpop.permute.xlu1 %1571 }
 0x203   : > { %1696 = vst [vmem:[%s3443_s4 + $0x70] sm:$0xff] %v1674_v13  ;;  %v1654_v22 = vmul.f32 %v1629_v47, %v1572_v3 }
 0x205   : > { %v1676_v42 = vadd.f32 %v1654_v22, %v3424_v6 }
 0x206   : > { %v1580_v26 = vpop.permute.xlu1 %1579 }
 0x207   : > { %1698 = vst [vmem:[%s3443_s4 + $0x80] sm:$0xff] %v1676_v42  ;;  %v1656_v0 = vmul.f32 %v1633_v4, %v1580_v26 }
 0x209   : > { %v1678_v11 = vadd.f32 %v1656_v0, %v3432_v36  ;;  %1710 = sbr.rel (!%p2380_p3) target bundleno = 591 (0x24f), region = 32 }
 0x20a   : > { %v1588_v25 = vpop.permute.xlu1 %1587 }
 0x20b   : > { %1700 = vst [vmem:[%s3443_s4 + $0x90] sm:$0xff] %v1678_v11  ;;  %v1658_v57 = vmul.f32 %v1637_v15, %v1588_v25 }
 0x20d   : > { %v1680_v20 = vadd.f32 %v1658_v57, %v3438_v40 }
 0x20f   : > { %1702 = vst [vmem:[%s3443_s4 + $0xa0] sm:$0xff] %v1680_v20 }
 0x210   : > { %s3892_s5 = smov (!%p1713_p9, %s1712_s5), 11 }
 0x211   : > { %s2058_s14 = sshll.u32 %s3892_s5, 8  ;;  %s2047_s16 = sshll.u32 %s3892_s5, 1 }
 0x212   : > { %p2048_p10 = scmp.eq.s32.totalorder %s2058_s14, 0 }
 0x213   : > { %2217 = sdivrem.u32 (!%p2048_p10), %s2047_s16, 22 }
 0x214   : > { %1725 = sbr.rel (%p2048_p10) target bundleno = 591 (0x24f), region = 36 }
 0x21c   : > { %s3524_s17 = spop.drf %2217 }
 0x21d   : > { %p2049_p11 = scmp.le.s32.totalorder %s3524_s17, 0 }
 0x21e   : > { %s3881_s11 = smov (!%p2049_p11), %s3516_s9  ;;  %s3882_s18 = smov (!%p2049_p11), %s3443_s4 }
 0x21f   : > { %1976 = sbr.rel (%p2049_p11) target bundleno = 562 (0x232), region = 115  ;;  %s3533_s20 = smov (!%p2049_p11), 0  }
 0x220   : > { %s3535_s21 = smov (!%p2049_p11), 0  }
 0x226 LB: >> { %v1831_v58 = vld [vmem:[%s2299_s18] sm:$0xff]  ;;  %v1833_v6 = vld [vmem:[%s2299_s18 + $0x8] sm:$0xff]  ;;  %v1835_v36 = vld [vmem:[%s2299_s18 + $0x10] sm:$0xff]  ;;  %s1875_s22 = sadd.s32 1, %s2303_s20  ;;  %s1825_s21 = sadd.s32 1, %s2307_s21   ;;  %s2307_s21 = sphi %s3535_s21, %s1825_s21   ;;  %s2303_s20 = sphi %s3533_s20, %s3884_s20   ;;  %s2299_s18 = sphi %s3882_s18, %s1880_s18   ;;  %s2295_s11 = sphi %s3881_s11, %s3883_s11  }
 0x227   : >> { %1832 = vst [vmem:[%s2295_s11] sm:$0xff] %v1831_v58  ;;  %1834 = vst [vmem:[%s2295_s11 + $0x8] sm:$0xff] %v1833_v6  ;;  %v1837_v40 = vld [vmem:[%s2299_s18 + $0x18] sm:$0xff]  ;;  %v1839_v48 = vld [vmem:[%s2299_s18 + $0x20] sm:$0xff]  ;;  %p1876_p12 = scmp.ge.s32.totalorder %s1875_s22, %s3524_s17  ;;  %p1824_p13 = scmp.ge.s32.totalorder %s1825_s21, %s3524_s17 }
 0x228   : >> { %1836 = vst [vmem:[%s2295_s11 + $0x10] sm:$0xff] %v1835_v36  ;;  %v1841_v49 = vld [vmem:[%s2299_s18 + $0x28] sm:$0xff]  ;;  %1838 = vst [vmem:[%s2295_s11 + $0x18] sm:$0xff] %v1837_v40  ;;  %v1843_v2 = vld [vmem:[%s2299_s18 + $0x30] sm:$0xff] }
 0x229   : >> { %1840 = vst [vmem:[%s2295_s11 + $0x20] sm:$0xff] %v1839_v48  ;;  %1842 = vst [vmem:[%s2295_s11 + $0x28] sm:$0xff] %v1841_v49  ;;  %v1845_v19 = vld [vmem:[%s2299_s18 + $0x38] sm:$0xff]  ;;  %v1847_v45 = vld [vmem:[%s2299_s18 + $0x40] sm:$0xff]  ;;  %s3894_s22 = smov (%p1876_p12, %s1875_s22), 0 }
 0x22a   : >> { %1844 = vst [vmem:[%s2295_s11 + $0x30] sm:$0xff] %v1843_v2  ;;  %1846 = vst [vmem:[%s2295_s11 + $0x38] sm:$0xff] %v1845_v19  ;;  %v1849_v50 = vld [vmem:[%s2299_s18 + $0x48] sm:$0xff]  ;;  %v1851_v60 = vld [vmem:[%s2299_s18 + $0x50] sm:$0xff]  ;;  %s1878_s23 = smul.u32 176, %s3894_s22  ;;  %s3884_s20 = smov %s3894_s22 }
 0x22b   : >> { %1848 = vst [vmem:[%s2295_s11 + $0x40] sm:$0xff] %v1847_v45  ;;  %v1853_v8 = vld [vmem:[%s2299_s18 + $0x58] sm:$0xff]  ;;  %1850 = vst [vmem:[%s2295_s11 + $0x48] sm:$0xff] %v1849_v50  ;;  %v1855_v56 = vld [vmem:[%s2299_s18 + $0x60] sm:$0xff]  ;;  %1827 = sbr.rel (!%p1824_p13) target bundleno = 550 (0x226), region = 121 }
 0x22c   : >> { %1852 = vst [vmem:[%s2295_s11 + $0x50] sm:$0xff] %v1851_v60  ;;  %1854 = vst [vmem:[%s2295_s11 + $0x58] sm:$0xff] %v1853_v8  ;;  %v1857_v61 = vld [vmem:[%s2299_s18 + $0x68] sm:$0xff]  ;;  %v1859_v33 = vld [vmem:[%s2299_s18 + $0x70] sm:$0xff]  ;;  %s1881_s24 = scalar_lea.vmem %s3516_s9, %s1878_s23  }
 0x22d   : >> { %1856 = vst [vmem:[%s2295_s11 + $0x60] sm:$0xff] %v1855_v56  ;;  %1858 = vst [vmem:[%s2295_s11 + $0x68] sm:$0xff] %v1857_v61  ;;  %v1861_v46 = vld [vmem:[%s2299_s18 + $0x78] sm:$0xff]  ;;  %v1863_v31 = vld [vmem:[%s2299_s18 + $0x80] sm:$0xff] }
 0x22e   : >> { %1860 = vst [vmem:[%s2295_s11 + $0x70] sm:$0xff] %v1859_v33  ;;  %v1865_v63 = vld [vmem:[%s2299_s18 + $0x88] sm:$0xff]  ;;  %1862 = vst [vmem:[%s2295_s11 + $0x78] sm:$0xff] %v1861_v46  ;;  %v1867_v14 = vld [vmem:[%s2299_s18 + $0x90] sm:$0xff] }
 0x22f   : >> { %1864 = vst [vmem:[%s2295_s11 + $0x80] sm:$0xff] %v1863_v31  ;;  %1866 = vst [vmem:[%s2295_s11 + $0x88] sm:$0xff] %v1865_v63  ;;  %v1869_v53 = vld [vmem:[%s2299_s18 + $0x98] sm:$0xff]  ;;  %v1871_v62 = vld [vmem:[%s2299_s18 + $0xa0] sm:$0xff] }
 0x230   : >> { %1868 = vst [vmem:[%s2295_s11 + $0x90] sm:$0xff] %v1867_v14  ;;  %1870 = vst [vmem:[%s2295_s11 + $0x98] sm:$0xff] %v1869_v53  ;;  %v1873_v47 = vld [vmem:[%s2299_s18 + $0xa8] sm:$0xff]  ;;  %s1880_s18 = scalar_lea.vmem %s3443_s4, %s1878_s23 [#allocation2]  }
 0x231   : >> { %1872 = vst [vmem:[%s2295_s11 + $0xa0] sm:$0xff] %v1871_v62  ;;  %1874 = vst [vmem:[%s2295_s11 + $0xa8] sm:$0xff] %v1873_v47  ;;  %s3883_s11 = smov %s1881_s24 }
 0x232 PF: > { %2219 = sdivrem.u32 %s2047_s16, 22 }
 0x233   : > { %s2050_s25 = smul.u32 176, %s3524_s17 }
 0x235   : > { %s1886_s26 = scalar_lea.vmem %s3443_s4, %s2050_s25 [#allocation2]   ;;  %s1888_s27 = scalar_lea.vmem %s3516_s9, %s2050_s25  }
 0x23b   : > { %s2220_s28 = spop.drf %2219 }
 0x23c   : > { %p2052_p0 = scmp.le.s32.totalorder %s2220_s28, 0 }
 0x23d   : > { %s2309_s29 = smov (!%p2052_p0), %s1888_s27   ;;  %s2313_s30 = smov (!%p2052_p0), %s1886_s26  }
 0x23e   : > { %1990 = sbr.rel (%p2052_p0) target bundleno = 591 (0x24f), region = 126  ;;  %s2317_s3 = smov (!%p2052_p0), 0  }
 0x23f   : > { %s2321_s6 = smov (!%p2052_p0), 0  }
 0x245 LB: >> { %v1898_v37 = vld [vmem:[%s2315_s30] sm:$0xff]  ;;  %s1900_s5 = sadd.s32 1, %s2319_s3  ;;  %s1892_s6 = sadd.s32 1, %s2323_s6   ;;  %s2323_s6 = sphi %s2321_s6, %s1892_s6   ;;  %s2319_s3 = sphi %s2317_s3, %s2318_s3   ;;  %s2315_s30 = sphi %s2313_s30, %s1905_s30   ;;  %s2311_s29 = sphi %s2309_s29, %s1906_s29  }
 0x246   : >> { %1899 = vst [vmem:[%s2311_s29] sm:$0xff] %v1898_v37  ;;  %p1901_p1 = scmp.ge.s32.totalorder %s1900_s5, %s2220_s28  ;;  %p1891_p2 = scmp.ge.s32.totalorder %s1892_s6, %s2220_s28 }
 0x248   : >> { %s3896_s5 = smov (%p1901_p1, %s1900_s5), 0  ;;  %1894 = sbr.rel (!%p1891_p2) target bundleno = 581 (0x245), region = 132 }
 0x249   : >> { %s2053_s4 = sshll.u32 %s3896_s5, 3  ;;  %s2318_s3 = smov %s3896_s5  }
 0x24a   : >> { %s1905_s30 = scalar_lea.vmem %s1886_s26, %s2053_s4 [#allocation2]   ;;  %s1906_s29 = scalar_lea.vmem %s1888_s27, %s2053_s4  }
 0x24f PF: > { %s12_s13 = sadd.s32 1, %s2291_s13   ;;  %s3885_s9 = smov %s2279_s10 }
 0x250   : > { %p9_p3 = scmp.ge.s32.totalorder %s12_s13, 4   ;;  %s3886_s10 = smov %s2389_s19 }
 0x251   : > { %s3887_s11 = smov %s2287_s12  ;;  %s3888_s12 = smov %s3890_s15 }
 0x252   :  { %11 = sbr.rel (!%p9_p3) target bundleno = 3 (0x3), region = 143 }

</bundles_post_ra>
